<compile_context>
chip_gen: v7x
topology: tpu7x:2x2x1
jax: 0.10.0
libtpu: 0.0.40
codegen_flags: <defaults>
</compile_context>

<pallas_src>
import numpy as np
import jax
import jax.numpy as jnp
from jax import lax
from jax.experimental import pallas as pl
from jax.experimental.pallas import tpu as pltpu


_LANE = 128
_VMEM_LIMIT_BYTES = 64 * 1024 * 1024   # > scoped defaults (16/32 MiB), <= v7x physical


def _round_up(x, m):
    return (x + m - 1) // m * m


def _gelu(x):
    # tanh-approximate GELU: the transcendental goes to the EUP slot instead of
    # a long f32 erf polynomial on the VALU.
    return jax.nn.gelu(x, approximate=True)


def _tensorcores_per_chip():
    try:
        kind = jax.devices()[0].device_kind.lower()
    except Exception:
        return 1
    return 2 if "v7" in kind else 1


def _make_kernel(rows, T, dilations, has_proj, taps_per_block):
    """rows = Bt*T folded rows per grid step (always a whole number of samples)."""
    n_blocks = len(dilations)

    def kernel(*refs):
        x_ref, fc_w_ref, fc_b_ref = refs[0], refs[1], refs[2]
        out_ref = refs[-1]
        w_refs = refs[3:-1]

        x = x_ref[...]                                             # (rows, D_in) f32
        nan_row = jnp.any(jnp.isnan(x), axis=-1, keepdims=True)    # (rows, 1)
        x = jnp.where(nan_row, 0.0, x)                             # x[~nan_mask] = 0

        # input_fc (bf16 operands, f32 accumulation)
        h = jnp.dot(x.astype(jnp.bfloat16), fc_w_ref[...],
                    preferred_element_type=jnp.float32) + fc_b_ref[...]
        # eval mode: mask = all_true & nan_mask -> zero rows containing NaNs
        h = jnp.where(nan_row, 0.0, h)

        # per-sample time index of each folded row (for shift masks)
        tmod = lax.broadcasted_iota(jnp.int32, (rows, 1), 0) % T

        def conv(h_bf, wf_ref, b_ref, d, taps, m_lo, m_hi):
            # One fused matmul over all taps: (rows, Cin_pad) @ (Cin_pad, taps*Cout_pad).
            p = jnp.dot(h_bf, wf_ref[...], preferred_element_type=jnp.float32)
            if taps == 3:
                cp = p.shape[1] // 3                       # Cout_pad, multiple of 128
                p0 = pltpu.roll(p[:, :cp], shift=d, axis=0)          # tap0[t]=p0[t-d]
                y = p[:, cp:2 * cp]                                  # center tap
                p2 = pltpu.roll(p[:, 2 * cp:], shift=rows - d, axis=0)  # tap2[t]=p2[t+d]
                y = y + jnp.where(m_lo, p0, 0.0) + jnp.where(m_hi, p2, 0.0)
            else:
                y = p                                      # d >= T: only the center tap
            return y + b_ref[...]

        idx = 0
        for blk in range(n_blocks):
            d = dilations[blk]
            taps = taps_per_block[blk]
            wf1, b1 = w_refs[idx], w_refs[idx + 1]
            wf2, b2 = w_refs[idx + 2], w_refs[idx + 3]
            idx += 4
            if has_proj[blk]:
                pw, pb = w_refs[idx], w_refs[idx + 1]
                idx += 2
                residual = jnp.dot(h.astype(jnp.bfloat16), pw[...],
                                   preferred_element_type=jnp.float32) + pb[...]
            else:
                residual = h

            # narrow (rows, 1) shift masks, one pair per block, reused by both convs
            if taps == 3:
                m_lo = tmod >= d
                m_hi = tmod < (T - d)
            else:
                m_lo = m_hi = None

            t = _gelu(h).astype(jnp.bfloat16)
            t = conv(t, wf1, b1, d, taps, m_lo, m_hi)
            t = _gelu(t).astype(jnp.bfloat16)
            t = conv(t, wf2, b2, d, taps, m_lo, m_hi)
            h = t + residual

        # repr_dropout is identity in eval mode; lane-dense bf16 store
        out_ref[...] = h.astype(out_ref.dtype)

    return kernel


def ts_encoder_f_forward(x, params, *, target_rows=1024):
    """x: (B, T, input_dims) float32.  Returns (B, T, output_dims) bfloat16."""
    B, T, D_in = x.shape
    blocks = params['blocks']
    dilations = tuple(int(b['dilation']) for b in blocks)
    has_proj = tuple('pw' in b for b in blocks)
    taps_per_block = tuple(3 if d < T else 1 for d in dilations)

    hidden = params['fc_w'].shape[1]
    h_pad = _round_up(hidden, _LANE)

    # chained padded channel widths per block (padded channels stay exactly 0)
    cin_pads, cout_pads = [], []
    cin, cin_p = hidden, h_pad
    for b in blocks:
        assert b['w1'].shape[1] == cin, "block input channels must chain"
        cout = b['w2'].shape[2]
        if 'pw' not in b:
            assert cout == cin, "identity residual requires Cin == Cout"
        cout_p = _round_up(cout, _LANE)
        cin_pads.append(cin_p)
        cout_pads.append(cout_p)
        cin, cin_p = cout, cout_p
    out_dim = blocks[-1]['w2'].shape[2]
    out_pad = cout_pads[-1]
    cmax = max([h_pad] + cout_pads)

    # ---- resident weights: bf16 matmul operands, f32 bias rows, 128-padded ----
    def pad2(w, rp, cp):
        r, c = w.shape
        return jnp.pad(w, ((0, rp - r), (0, cp - c))) if (rp > r or cp > c) else w

    def bias_row(b, cp):
        b = b.reshape(1, -1)
        return jnp.pad(b, ((0, 0), (0, cp - b.shape[1]))) if b.shape[1] < cp else b

    def pack_conv(w, cinp, coutp, taps):
        # w: (3, Cin, Cout) with y[t] = sum_k x[t+(k-1)*d] @ w[k] + b.
        _, c_in, c_out = w.shape
        wp = jnp.pad(w, ((0, 0), (0, cinp - c_in), (0, coutp - c_out)))
        wf = jnp.concatenate([wp[0], wp[1], wp[2]], axis=1) if taps == 3 else wp[1]
        return wf.astype(jnp.bfloat16)

    weight_inputs = [pad2(params['fc_w'], D_in, h_pad).astype(jnp.bfloat16),
                     bias_row(params['fc_b'], h_pad)]
    for bi, b in enumerate(blocks):
        cinp, coutp, taps = cin_pads[bi], cout_pads[bi], taps_per_block[bi]
        weight_inputs += [pack_conv(b['w1'], cinp, coutp, taps),
                          bias_row(b['b1'], coutp),
                          pack_conv(b['w2'], coutp, coutp, taps),
                          bias_row(b['b2'], coutp)]
        if 'pw' in b:
            weight_inputs += [pad2(b['pw'], cinp, coutp).astype(jnp.bfloat16),
                              bias_row(b['pb'], coutp)]
    wbytes = sum(int(np.prod(a.shape)) * a.dtype.itemsize for a in weight_inputs)

    # ---- fold samples into the matmul M dim; size the slab for the VMEM budget ----
    bytes_per_row = (2 * (D_in * 4 + out_pad * 2)   # double-buffered x (f32) / out (bf16)
                     + 48 * cmax)                   # live in-kernel f32 temporaries (generous)
    rows_cap = max(T, (_VMEM_LIMIT_BYTES // 2 - 2 * wbytes) // bytes_per_row)
    Bt = min(B, max(1, min(target_rows, rows_cap) // T))

    def align(bt, mult):
        while bt < B and (bt * T) % mult:
            bt += 1
        return bt

    bt16, bt8 = align(Bt, 16), align(Bt, 8)   # prefer 16-row (bf16 sublane) alignment
    Bt = bt16 if bt16 <= 2 * bt8 else bt8

    # 2-TC chips (v7x): keep >= 2 grid steps so both TensorCores get work
    if _tensorcores_per_chip() >= 2 and Bt >= B and B >= 2:
        bt_split = align((B + 1) // 2, 8)
        if bt_split < B:
            Bt = bt_split

    B_pad = B if Bt >= B else ((B + Bt - 1) // Bt) * Bt
    rows_step = Bt * T
    rows_total = B_pad * T
    # roll-and-mask correctness relies on a sample never straddling grid steps
    assert rows_step % T == 0 and rows_total % rows_step == 0

    if B_pad > B:
        x = jnp.pad(x, ((0, B_pad - B), (0, 0), (0, 0)))
    x2d = x.reshape(rows_total, D_in)

    def full_spec(a):
        nd = a.ndim
        # TODO(synk): pipeline_mode=pl.Buffered(1) would single-buffer these
        # grid-invariant weights (v7x VMEM saving) once the pallas_call grid
        # pipeliner supports it.
        return pl.BlockSpec(a.shape, lambda i, _nd=nd: (0,) * _nd)

    in_specs = [pl.BlockSpec((rows_step, D_in), lambda i: (i, 0))]
    in_specs += [full_spec(a) for a in weight_inputs]

    kernel = _make_kernel(rows_step, T, dilations, has_proj, taps_per_block)

    out2d = pl.pallas_call(
        kernel,
        out_shape=jax.ShapeDtypeStruct((rows_total, out_pad), jnp.bfloat16),
        grid=(rows_total // rows_step,),
        in_specs=in_specs,
        out_specs=pl.BlockSpec((rows_step, out_pad), lambda i: (i, 0)),
        compiler_params=pltpu.CompilerParams(
            dimension_semantics=("parallel",),
            vmem_limit_bytes=_VMEM_LIMIT_BYTES),
    )(x2d, *weight_inputs)

    return out2d.reshape(B_pad, T, out_pad)[:B, :, :out_dim]


def init_params(key, input_dims, output_dims, hidden_dims, depth):
    n_keys = 2 + 6 * (depth + 1)
    keys = jax.random.split(key, n_keys)
    counter = iter(range(n_keys))

    def nrm(shape, scale=0.1):
        return scale * jax.random.normal(keys[next(counter)], shape,
                                         dtype=jnp.float32)

    params = {
        'fc_w': nrm((input_dims, hidden_dims)),
        'fc_b': nrm((hidden_dims,)),
        'blocks': [],
    }
    channels = [hidden_dims] * depth + [output_dims]
    in_c = hidden_dims
    for i, out_c in enumerate(channels):
        final = (i == len(channels) - 1)
        blk = {
            'dilation': 2 ** i,
            'w1': nrm((3, in_c, out_c)),   # (kernel, C_in, C_out)
            'b1': nrm((out_c,)),
            'w2': nrm((3, out_c, out_c)),
            'b2': nrm((out_c,)),
        }
        if in_c != out_c or final:         # 1x1 projector on residual path
            blk['pw'] = nrm((in_c, out_c))
            blk['pb'] = nrm((out_c,))
        params['blocks'].append(blk)
        in_c = out_c
    return params


def reference_forward(x, params):
    """Pure-JAX f32 reference of the eval-mode PyTorch forward (exact-erf GELU)."""
    nan_row = jnp.any(jnp.isnan(x), axis=-1, keepdims=True)
    x = jnp.where(nan_row, 0.0, x)
    h = x @ params['fc_w'] + params['fc_b']
    h = jnp.where(nan_row, 0.0, h)
    for b in params['blocks']:
        d = b['dilation']
        residual = (h @ b['pw'] + b['pb']) if 'pw' in b else h

        def conv(t, w, bias, d=d):
            T = t.shape[1]
            tp = jnp.pad(t, ((0, 0), (d, d), (0, 0)))
            return (tp[:, 0:T] @ w[0] + tp[:, d:d + T] @ w[1]
                    + tp[:, 2 * d:2 * d + T] @ w[2] + bias)

        t = jax.nn.gelu(h, approximate=False)
        t = conv(t, b['w1'], b['b1'])
        t = jax.nn.gelu(t, approximate=False)
        t = conv(t, b['w2'], b['b2'])
        h = t + residual
    return h


if __name__ == "__main__":
    B, T, D_IN, HIDDEN, OUT, DEPTH = 2, 8, 4, 32, 16, 2

    key = jax.random.PRNGKey(0)
    kx, kp = jax.random.split(key)
    x = jax.random.normal(kx, (B, T, D_IN), dtype=jnp.float32)
    # exercise the NaN-row masking path
    x = x.at[0, 3, 1].set(jnp.nan)
    x = x.at[1, 6, 0].set(jnp.nan)

    params = init_params(kp, D_IN, OUT, HIDDEN, DEPTH)

    out = ts_encoder_f_forward(x, params)
    out = jax.block_until_ready(out)

    ref = reference_forward(x, params)
    assert out.shape == (B, T, OUT)
    # atol headroom covers bf16 matmul operands, the bf16 output store, and the
    # tanh-GELU approximation vs the exact-erf f32 reference.
    np.testing.assert_allclose(np.asarray(out).astype(np.float32),
                               np.asarray(ref), rtol=2e-2, atol=3e-2)
    print("KERNEL_OK")
</pallas_src>

<mosaic_0001>
module attributes {stable_mosaic.version = 11 : i64} {
  func.func @kernel(%arg0: i32, %arg1: memref<16x4xf32, #tpu.memory_space<vmem>>, %arg2: memref<4x128xbf16, #tpu.memory_space<vmem>>, %arg3: memref<1x128xf32, #tpu.memory_space<vmem>>, %arg4: memref<128x384xbf16, #tpu.memory_space<vmem>>, %arg5: memref<1x128xf32, #tpu.memory_space<vmem>>, %arg6: memref<128x384xbf16, #tpu.memory_space<vmem>>, %arg7: memref<1x128xf32, #tpu.memory_space<vmem>>, %arg8: memref<128x384xbf16, #tpu.memory_space<vmem>>, %arg9: memref<1x128xf32, #tpu.memory_space<vmem>>, %arg10: memref<128x384xbf16, #tpu.memory_space<vmem>>, %arg11: memref<1x128xf32, #tpu.memory_space<vmem>>, %arg12: memref<128x384xbf16, #tpu.memory_space<vmem>>, %arg13: memref<1x128xf32, #tpu.memory_space<vmem>>, %arg14: memref<128x384xbf16, #tpu.memory_space<vmem>>, %arg15: memref<1x128xf32, #tpu.memory_space<vmem>>, %arg16: memref<128x128xbf16, #tpu.memory_space<vmem>>, %arg17: memref<1x128xf32, #tpu.memory_space<vmem>>, %arg18: memref<16x128xbf16, #tpu.memory_space<vmem>>) attributes {dimension_semantics = [#tpu.dimension_semantics<parallel>], iteration_bounds = array<i64: 1>, scalar_prefetch = 0 : i64, scratch_operands = 0 : i64, tpu.core_type = #tpu.core_type<tc>, window_params = [{transform_indices = @transform_0, window_bounds = array<i64: 16, 4>}, {pipeline_mode = #tpu.pipeline_mode<synchronous>, transform_indices = @transform_1, window_bounds = array<i64: 4, 128>}, {pipeline_mode = #tpu.pipeline_mode<synchronous>, transform_indices = @transform_2, window_bounds = array<i64: 1, 128>}, {pipeline_mode = #tpu.pipeline_mode<synchronous>, transform_indices = @transform_3, window_bounds = array<i64: 128, 384>}, {pipeline_mode = #tpu.pipeline_mode<synchronous>, transform_indices = @transform_4, window_bounds = array<i64: 1, 128>}, {pipeline_mode = #tpu.pipeline_mode<synchronous>, transform_indices = @transform_5, window_bounds = array<i64: 128, 384>}, {pipeline_mode = #tpu.pipeline_mode<synchronous>, transform_indices = @transform_6, window_bounds = array<i64: 1, 128>}, {pipeline_mode = #tpu.pipeline_mode<synchronous>, transform_indices = @transform_7, window_bounds = array<i64: 128, 384>}, {pipeline_mode = #tpu.pipeline_mode<synchronous>, transform_indices = @transform_8, window_bounds = array<i64: 1, 128>}, {pipeline_mode = #tpu.pipeline_mode<synchronous>, transform_indices = @transform_9, window_bounds = array<i64: 128, 384>}, {pipeline_mode = #tpu.pipeline_mode<synchronous>, transform_indices = @transform_10, window_bounds = array<i64: 1, 128>}, {pipeline_mode = #tpu.pipeline_mode<synchronous>, transform_indices = @transform_11, window_bounds = array<i64: 128, 384>}, {pipeline_mode = #tpu.pipeline_mode<synchronous>, transform_indices = @transform_12, window_bounds = array<i64: 1, 128>}, {pipeline_mode = #tpu.pipeline_mode<synchronous>, transform_indices = @transform_13, window_bounds = array<i64: 128, 384>}, {pipeline_mode = #tpu.pipeline_mode<synchronous>, transform_indices = @transform_14, window_bounds = array<i64: 1, 128>}, {pipeline_mode = #tpu.pipeline_mode<synchronous>, transform_indices = @transform_15, window_bounds = array<i64: 128, 128>}, {pipeline_mode = #tpu.pipeline_mode<synchronous>, transform_indices = @transform_16, window_bounds = array<i64: 1, 128>}, {transform_indices = @transform_17, window_bounds = array<i64: 16, 128>}]} {
    %c0 = arith.constant 0 : index
    %c0_0 = arith.constant 0 : index
    %0 = vector.load %arg1[%c0, %c0_0] : memref<16x4xf32, #tpu.memory_space<vmem>>, vector<16x4xf32>
    %1 = arith.cmpf one, %0, %0 : vector<16x4xf32>
    %cst = arith.constant 1.000000e+00 : f32
    %cst_1 = arith.constant 0.000000e+00 : f32
    %2 = vector.broadcast %cst : f32 to vector<16x4xf32>
    %3 = vector.broadcast %cst_1 : f32 to vector<16x4xf32>
    %4 = arith.select %1, %2, %3 : vector<16x4xi1>, vector<16x4xf32>
    %cst_2 = arith.constant dense<0xFF800000> : vector<16xf32>
    %5 = vector.multi_reduction <maximumf>, %4, %cst_2 [1] : vector<16x4xf32> to vector<16xf32>
    %cst_3 = arith.constant 0.000000e+00 : f32
    %6 = vector.broadcast %cst_3 : f32 to vector<16xf32>
    %7 = arith.cmpf ogt, %5, %6 : vector<16xf32>
    %8 = vector.shape_cast %7 : vector<16xi1> to vector<16x1xi1>
    %cst_4 = arith.constant 0.000000e+00 : f32
    %9 = vector.shape_cast %8 : vector<16x1xi1> to vector<16x1xi1>
    %10 = vector.broadcast %9 : vector<16x1xi1> to vector<16x4xi1>
    %11 = vector.broadcast %cst_4 : f32 to vector<16x4xf32>
    %12 = arith.select %10, %11, %0 : vector<16x4xi1>, vector<16x4xf32>
    %13 = arith.truncf %12 : vector<16x4xf32> to vector<16x4xbf16>
    %c0_5 = arith.constant 0 : index
    %c0_6 = arith.constant 0 : index
    %14 = vector.load %arg2[%c0_5, %c0_6] : memref<4x128xbf16, #tpu.memory_space<vmem>>, vector<4x128xbf16>
    %cst_7 = arith.constant dense<0.000000e+00> : vector<16x128xf32>
    %15 = tpu.matmul %13, %14, %cst_7 {dimension_numbers = #tpu.dot_dimension_numbers<[1], [0], [0], [1], [0, 0, 1, 1], [], []>} : vector<16x4xbf16>, vector<4x128xbf16>, vector<16x128xf32> -> vector<16x128xf32>
    %c0_8 = arith.constant 0 : index
    %c0_9 = arith.constant 0 : index
    %16 = vector.load %arg3[%c0_8, %c0_9] : memref<1x128xf32, #tpu.memory_space<vmem>>, vector<1x128xf32>
    %17 = vector.broadcast %16 : vector<1x128xf32> to vector<16x128xf32>
    %18 = arith.addf %15, %17 : vector<16x128xf32>
    %cst_10 = arith.constant 0.000000e+00 : f32
    %19 = vector.shape_cast %8 : vector<16x1xi1> to vector<16x1xi1>
    %20 = vector.broadcast %19 : vector<16x1xi1> to vector<16x128xi1>
    %21 = vector.broadcast %cst_10 : f32 to vector<16x128xf32>
    %22 = arith.select %20, %21, %18 : vector<16x128xi1>, vector<16x128xf32>
    %23 = tpu.iota {dimensions = array<i32: 0>} : vector<16x1xi32>
    %c8_i32 = arith.constant 8 : i32
    %c0_i32 = arith.constant 0 : i32
    %24 = arith.cmpi eq, %c8_i32, %c0_i32 : i32
    %c1_i32 = arith.constant 1 : i32
    %25 = arith.select %24, %c1_i32, %c8_i32 : i32
    %26 = vector.broadcast %25 : i32 to vector<16x1xi32>
    %27 = arith.remsi %23, %26 : vector<16x1xi32>
    %c0_i32_11 = arith.constant 0 : i32
    %28 = vector.broadcast %c0_i32_11 : i32 to vector<16x1xi32>
    %29 = arith.cmpi ne, %27, %28 : vector<16x1xi32>
    %c0_i32_12 = arith.constant 0 : i32
    %30 = vector.broadcast %c0_i32_12 : i32 to vector<16x1xi32>
    %31 = arith.cmpi slt, %27, %30 : vector<16x1xi32>
    %c0_i32_13 = arith.constant 0 : i32
    %32 = arith.cmpi slt, %25, %c0_i32_13 : i32
    %33 = vector.broadcast %32 : i1 to vector<16x1xi1>
    %34 = vector.broadcast %33 : vector<16x1xi1> to vector<16x1xi1>
    %35 = arith.xori %31, %34 : vector<16x1xi1>
    %36 = arith.andi %35, %29 : vector<16x1xi1>
    %37 = vector.broadcast %25 : i32 to vector<16x1xi32>
    %38 = arith.addi %27, %37 : vector<16x1xi32>
    %39 = arith.select %36, %38, %27 : vector<16x1xi1>, vector<16x1xi32>
    %c1_i32_14 = arith.constant 1 : i32
    %40 = vector.broadcast %c1_i32_14 : i32 to vector<16x1xi32>
    %41 = arith.cmpi sge, %39, %40 : vector<16x1xi32>
    %c7_i32 = arith.constant 7 : i32
    %42 = vector.broadcast %c7_i32 : i32 to vector<16x1xi32>
    %43 = arith.cmpi slt, %39, %42 : vector<16x1xi32>
    %44 = arith.mulf %22, %22 : vector<16x128xf32>
    %45 = arith.mulf %22, %44 : vector<16x128xf32>
    %cst_15 = arith.constant 4.471500e-02 : f32
    %46 = vector.broadcast %cst_15 : f32 to vector<16x128xf32>
    %47 = arith.mulf %46, %45 : vector<16x128xf32>
    %48 = arith.addf %22, %47 : vector<16x128xf32>
    %cst_16 = arith.constant 0.797884583 : f32
    %49 = vector.broadcast %cst_16 : f32 to vector<16x128xf32>
    %50 = arith.mulf %49, %48 : vector<16x128xf32>
    %51 = math.tanh %50 : vector<16x128xf32>
    %cst_17 = arith.constant 1.000000e+00 : f32
    %52 = vector.broadcast %cst_17 : f32 to vector<16x128xf32>
    %53 = arith.addf %52, %51 : vector<16x128xf32>
    %cst_18 = arith.constant 5.000000e-01 : f32
    %54 = vector.broadcast %cst_18 : f32 to vector<16x128xf32>
    %55 = arith.mulf %54, %53 : vector<16x128xf32>
    %56 = arith.mulf %22, %55 : vector<16x128xf32>
    %57 = arith.truncf %56 : vector<16x128xf32> to vector<16x128xbf16>
    %c0_19 = arith.constant 0 : index
    %c0_20 = arith.constant 0 : index
    %58 = vector.load %arg4[%c0_19, %c0_20] : memref<128x384xbf16, #tpu.memory_space<vmem>>, vector<128x384xbf16>
    %cst_21 = arith.constant dense<0.000000e+00> : vector<16x384xf32>
    %59 = tpu.matmul %57, %58, %cst_21 {dimension_numbers = #tpu.dot_dimension_numbers<[1], [0], [0], [1], [0, 0, 1, 1], [], []>} : vector<16x128xbf16>, vector<128x384xbf16>, vector<16x384xf32> -> vector<16x384xf32>
    %60 = vector.extract_strided_slice %59 {offsets = [0, 0], sizes = [16, 128], strides = [1, 1]} : vector<16x384xf32> to vector<16x128xf32>
    %c1_i32_22 = arith.constant 1 : i32
    %61 = tpu.dynamic_rotate %60 by %c1_i32_22 dim 0 : vector<16x128xf32>, i32 -> vector<16x128xf32>
    %62 = vector.extract_strided_slice %59 {offsets = [0, 128], sizes = [16, 128], strides = [1, 1]} : vector<16x384xf32> to vector<16x128xf32>
    %63 = vector.extract_strided_slice %59 {offsets = [0, 256], sizes = [16, 128], strides = [1, 1]} : vector<16x384xf32> to vector<16x128xf32>
    %c15_i32 = arith.constant 15 : i32
    %64 = tpu.dynamic_rotate %63 by %c15_i32 dim 0 : vector<16x128xf32>, i32 -> vector<16x128xf32>
    %cst_23 = arith.constant 0.000000e+00 : f32
    %65 = vector.shape_cast %41 : vector<16x1xi1> to vector<16x1xi1>
    %66 = vector.broadcast %65 : vector<16x1xi1> to vector<16x128xi1>
    %67 = vector.broadcast %cst_23 : f32 to vector<16x128xf32>
    %68 = arith.select %66, %61, %67 : vector<16x128xi1>, vector<16x128xf32>
    %69 = arith.addf %62, %68 : vector<16x128xf32>
    %cst_24 = arith.constant 0.000000e+00 : f32
    %70 = vector.shape_cast %43 : vector<16x1xi1> to vector<16x1xi1>
    %71 = vector.broadcast %70 : vector<16x1xi1> to vector<16x128xi1>
    %72 = vector.broadcast %cst_24 : f32 to vector<16x128xf32>
    %73 = arith.select %71, %64, %72 : vector<16x128xi1>, vector<16x128xf32>
    %74 = arith.addf %69, %73 : vector<16x128xf32>
    %c0_25 = arith.constant 0 : index
    %c0_26 = arith.constant 0 : index
    %75 = vector.load %arg5[%c0_25, %c0_26] : memref<1x128xf32, #tpu.memory_space<vmem>>, vector<1x128xf32>
    %76 = vector.broadcast %75 : vector<1x128xf32> to vector<16x128xf32>
    %77 = arith.addf %74, %76 : vector<16x128xf32>
    %78 = arith.mulf %77, %77 : vector<16x128xf32>
    %79 = arith.mulf %77, %78 : vector<16x128xf32>
    %cst_27 = arith.constant 4.471500e-02 : f32
    %80 = vector.broadcast %cst_27 : f32 to vector<16x128xf32>
    %81 = arith.mulf %80, %79 : vector<16x128xf32>
    %82 = arith.addf %77, %81 : vector<16x128xf32>
    %cst_28 = arith.constant 0.797884583 : f32
    %83 = vector.broadcast %cst_28 : f32 to vector<16x128xf32>
    %84 = arith.mulf %83, %82 : vector<16x128xf32>
    %85 = math.tanh %84 : vector<16x128xf32>
    %cst_29 = arith.constant 1.000000e+00 : f32
    %86 = vector.broadcast %cst_29 : f32 to vector<16x128xf32>
    %87 = arith.addf %86, %85 : vector<16x128xf32>
    %cst_30 = arith.constant 5.000000e-01 : f32
    %88 = vector.broadcast %cst_30 : f32 to vector<16x128xf32>
    %89 = arith.mulf %88, %87 : vector<16x128xf32>
    %90 = arith.mulf %77, %89 : vector<16x128xf32>
    %91 = arith.truncf %90 : vector<16x128xf32> to vector<16x128xbf16>
    %c0_31 = arith.constant 0 : index
    %c0_32 = arith.constant 0 : index
    %92 = vector.load %arg6[%c0_31, %c0_32] : memref<128x384xbf16, #tpu.memory_space<vmem>>, vector<128x384xbf16>
    %cst_33 = arith.constant dense<0.000000e+00> : vector<16x384xf32>
    %93 = tpu.matmul %91, %92, %cst_33 {dimension_numbers = #tpu.dot_dimension_numbers<[1], [0], [0], [1], [0, 0, 1, 1], [], []>} : vector<16x128xbf16>, vector<128x384xbf16>, vector<16x384xf32> -> vector<16x384xf32>
    %94 = vector.extract_strided_slice %93 {offsets = [0, 0], sizes = [16, 128], strides = [1, 1]} : vector<16x384xf32> to vector<16x128xf32>
    %c1_i32_34 = arith.constant 1 : i32
    %95 = tpu.dynamic_rotate %94 by %c1_i32_34 dim 0 : vector<16x128xf32>, i32 -> vector<16x128xf32>
    %96 = vector.extract_strided_slice %93 {offsets = [0, 128], sizes = [16, 128], strides = [1, 1]} : vector<16x384xf32> to vector<16x128xf32>
    %97 = vector.extract_strided_slice %93 {offsets = [0, 256], sizes = [16, 128], strides = [1, 1]} : vector<16x384xf32> to vector<16x128xf32>
    %c15_i32_35 = arith.constant 15 : i32
    %98 = tpu.dynamic_rotate %97 by %c15_i32_35 dim 0 : vector<16x128xf32>, i32 -> vector<16x128xf32>
    %cst_36 = arith.constant 0.000000e+00 : f32
    %99 = vector.shape_cast %41 : vector<16x1xi1> to vector<16x1xi1>
    %100 = vector.broadcast %99 : vector<16x1xi1> to vector<16x128xi1>
    %101 = vector.broadcast %cst_36 : f32 to vector<16x128xf32>
    %102 = arith.select %100, %95, %101 : vector<16x128xi1>, vector<16x128xf32>
    %103 = arith.addf %96, %102 : vector<16x128xf32>
    %cst_37 = arith.constant 0.000000e+00 : f32
    %104 = vector.shape_cast %43 : vector<16x1xi1> to vector<16x1xi1>
    %105 = vector.broadcast %104 : vector<16x1xi1> to vector<16x128xi1>
    %106 = vector.broadcast %cst_37 : f32 to vector<16x128xf32>
    %107 = arith.select %105, %98, %106 : vector<16x128xi1>, vector<16x128xf32>
    %108 = arith.addf %103, %107 : vector<16x128xf32>
    %c0_38 = arith.constant 0 : index
    %c0_39 = arith.constant 0 : index
    %109 = vector.load %arg7[%c0_38, %c0_39] : memref<1x128xf32, #tpu.memory_space<vmem>>, vector<1x128xf32>
    %110 = vector.broadcast %109 : vector<1x128xf32> to vector<16x128xf32>
    %111 = arith.addf %108, %110 : vector<16x128xf32>
    %112 = arith.addf %111, %22 : vector<16x128xf32>
    %c2_i32 = arith.constant 2 : i32
    %113 = vector.broadcast %c2_i32 : i32 to vector<16x1xi32>
    %114 = arith.cmpi sge, %39, %113 : vector<16x1xi32>
    %c6_i32 = arith.constant 6 : i32
    %115 = vector.broadcast %c6_i32 : i32 to vector<16x1xi32>
    %116 = arith.cmpi slt, %39, %115 : vector<16x1xi32>
    %117 = arith.mulf %112, %112 : vector<16x128xf32>
    %118 = arith.mulf %112, %117 : vector<16x128xf32>
    %cst_40 = arith.constant 4.471500e-02 : f32
    %119 = vector.broadcast %cst_40 : f32 to vector<16x128xf32>
    %120 = arith.mulf %119, %118 : vector<16x128xf32>
    %121 = arith.addf %112, %120 : vector<16x128xf32>
    %cst_41 = arith.constant 0.797884583 : f32
    %122 = vector.broadcast %cst_41 : f32 to vector<16x128xf32>
    %123 = arith.mulf %122, %121 : vector<16x128xf32>
    %124 = math.tanh %123 : vector<16x128xf32>
    %cst_42 = arith.constant 1.000000e+00 : f32
    %125 = vector.broadcast %cst_42 : f32 to vector<16x128xf32>
    %126 = arith.addf %125, %124 : vector<16x128xf32>
    %cst_43 = arith.constant 5.000000e-01 : f32
    %127 = vector.broadcast %cst_43 : f32 to vector<16x128xf32>
    %128 = arith.mulf %127, %126 : vector<16x128xf32>
    %129 = arith.mulf %112, %128 : vector<16x128xf32>
    %130 = arith.truncf %129 : vector<16x128xf32> to vector<16x128xbf16>
    %c0_44 = arith.constant 0 : index
    %c0_45 = arith.constant 0 : index
    %131 = vector.load %arg8[%c0_44, %c0_45] : memref<128x384xbf16, #tpu.memory_space<vmem>>, vector<128x384xbf16>
    %cst_46 = arith.constant dense<0.000000e+00> : vector<16x384xf32>
    %132 = tpu.matmul %130, %131, %cst_46 {dimension_numbers = #tpu.dot_dimension_numbers<[1], [0], [0], [1], [0, 0, 1, 1], [], []>} : vector<16x128xbf16>, vector<128x384xbf16>, vector<16x384xf32> -> vector<16x384xf32>
    %133 = vector.extract_strided_slice %132 {offsets = [0, 0], sizes = [16, 128], strides = [1, 1]} : vector<16x384xf32> to vector<16x128xf32>
    %c2_i32_47 = arith.constant 2 : i32
    %134 = tpu.dynamic_rotate %133 by %c2_i32_47 dim 0 : vector<16x128xf32>, i32 -> vector<16x128xf32>
    %135 = vector.extract_strided_slice %132 {offsets = [0, 128], sizes = [16, 128], strides = [1, 1]} : vector<16x384xf32> to vector<16x128xf32>
    %136 = vector.extract_strided_slice %132 {offsets = [0, 256], sizes = [16, 128], strides = [1, 1]} : vector<16x384xf32> to vector<16x128xf32>
    %c14_i32 = arith.constant 14 : i32
    %137 = tpu.dynamic_rotate %136 by %c14_i32 dim 0 : vector<16x128xf32>, i32 -> vector<16x128xf32>
    %cst_48 = arith.constant 0.000000e+00 : f32
    %138 = vector.shape_cast %114 : vector<16x1xi1> to vector<16x1xi1>
    %139 = vector.broadcast %138 : vector<16x1xi1> to vector<16x128xi1>
    %140 = vector.broadcast %cst_48 : f32 to vector<16x128xf32>
    %141 = arith.select %139, %134, %140 : vector<16x128xi1>, vector<16x128xf32>
    %142 = arith.addf %135, %141 : vector<16x128xf32>
    %cst_49 = arith.constant 0.000000e+00 : f32
    %143 = vector.shape_cast %116 : vector<16x1xi1> to vector<16x1xi1>
    %144 = vector.broadcast %143 : vector<16x1xi1> to vector<16x128xi1>
    %145 = vector.broadcast %cst_49 : f32 to vector<16x128xf32>
    %146 = arith.select %144, %137, %145 : vector<16x128xi1>, vector<16x128xf32>
    %147 = arith.addf %142, %146 : vector<16x128xf32>
    %c0_50 = arith.constant 0 : index
    %c0_51 = arith.constant 0 : index
    %148 = vector.load %arg9[%c0_50, %c0_51] : memref<1x128xf32, #tpu.memory_space<vmem>>, vector<1x128xf32>
    %149 = vector.broadcast %148 : vector<1x128xf32> to vector<16x128xf32>
    %150 = arith.addf %147, %149 : vector<16x128xf32>
    %151 = arith.mulf %150, %150 : vector<16x128xf32>
    %152 = arith.mulf %150, %151 : vector<16x128xf32>
    %cst_52 = arith.constant 4.471500e-02 : f32
    %153 = vector.broadcast %cst_52 : f32 to vector<16x128xf32>
    %154 = arith.mulf %153, %152 : vector<16x128xf32>
    %155 = arith.addf %150, %154 : vector<16x128xf32>
    %cst_53 = arith.constant 0.797884583 : f32
    %156 = vector.broadcast %cst_53 : f32 to vector<16x128xf32>
    %157 = arith.mulf %156, %155 : vector<16x128xf32>
    %158 = math.tanh %157 : vector<16x128xf32>
    %cst_54 = arith.constant 1.000000e+00 : f32
    %159 = vector.broadcast %cst_54 : f32 to vector<16x128xf32>
    %160 = arith.addf %159, %158 : vector<16x128xf32>
    %cst_55 = arith.constant 5.000000e-01 : f32
    %161 = vector.broadcast %cst_55 : f32 to vector<16x128xf32>
    %162 = arith.mulf %161, %160 : vector<16x128xf32>
    %163 = arith.mulf %150, %162 : vector<16x128xf32>
    %164 = arith.truncf %163 : vector<16x128xf32> to vector<16x128xbf16>
    %c0_56 = arith.constant 0 : index
    %c0_57 = arith.constant 0 : index
    %165 = vector.load %arg10[%c0_56, %c0_57] : memref<128x384xbf16, #tpu.memory_space<vmem>>, vector<128x384xbf16>
    %cst_58 = arith.constant dense<0.000000e+00> : vector<16x384xf32>
    %166 = tpu.matmul %164, %165, %cst_58 {dimension_numbers = #tpu.dot_dimension_numbers<[1], [0], [0], [1], [0, 0, 1, 1], [], []>} : vector<16x128xbf16>, vector<128x384xbf16>, vector<16x384xf32> -> vector<16x384xf32>
    %167 = vector.extract_strided_slice %166 {offsets = [0, 0], sizes = [16, 128], strides = [1, 1]} : vector<16x384xf32> to vector<16x128xf32>
    %c2_i32_59 = arith.constant 2 : i32
    %168 = tpu.dynamic_rotate %167 by %c2_i32_59 dim 0 : vector<16x128xf32>, i32 -> vector<16x128xf32>
    %169 = vector.extract_strided_slice %166 {offsets = [0, 128], sizes = [16, 128], strides = [1, 1]} : vector<16x384xf32> to vector<16x128xf32>
    %170 = vector.extract_strided_slice %166 {offsets = [0, 256], sizes = [16, 128], strides = [1, 1]} : vector<16x384xf32> to vector<16x128xf32>
    %c14_i32_60 = arith.constant 14 : i32
    %171 = tpu.dynamic_rotate %170 by %c14_i32_60 dim 0 : vector<16x128xf32>, i32 -> vector<16x128xf32>
    %cst_61 = arith.constant 0.000000e+00 : f32
    %172 = vector.shape_cast %114 : vector<16x1xi1> to vector<16x1xi1>
    %173 = vector.broadcast %172 : vector<16x1xi1> to vector<16x128xi1>
    %174 = vector.broadcast %cst_61 : f32 to vector<16x128xf32>
    %175 = arith.select %173, %168, %174 : vector<16x128xi1>, vector<16x128xf32>
    %176 = arith.addf %169, %175 : vector<16x128xf32>
    %cst_62 = arith.constant 0.000000e+00 : f32
    %177 = vector.shape_cast %116 : vector<16x1xi1> to vector<16x1xi1>
    %178 = vector.broadcast %177 : vector<16x1xi1> to vector<16x128xi1>
    %179 = vector.broadcast %cst_62 : f32 to vector<16x128xf32>
    %180 = arith.select %178, %171, %179 : vector<16x128xi1>, vector<16x128xf32>
    %181 = arith.addf %176, %180 : vector<16x128xf32>
    %c0_63 = arith.constant 0 : index
    %c0_64 = arith.constant 0 : index
    %182 = vector.load %arg11[%c0_63, %c0_64] : memref<1x128xf32, #tpu.memory_space<vmem>>, vector<1x128xf32>
    %183 = vector.broadcast %182 : vector<1x128xf32> to vector<16x128xf32>
    %184 = arith.addf %181, %183 : vector<16x128xf32>
    %185 = arith.addf %184, %112 : vector<16x128xf32>
    %186 = arith.truncf %185 : vector<16x128xf32> to vector<16x128xbf16>
    %c0_65 = arith.constant 0 : index
    %c0_66 = arith.constant 0 : index
    %187 = vector.load %arg16[%c0_65, %c0_66] : memref<128x128xbf16, #tpu.memory_space<vmem>>, vector<128x128xbf16>
    %cst_67 = arith.constant dense<0.000000e+00> : vector<16x128xf32>
    %188 = tpu.matmul %186, %187, %cst_67 {dimension_numbers = #tpu.dot_dimension_numbers<[1], [0], [0], [1], [0, 0, 1, 1], [], []>} : vector<16x128xbf16>, vector<128x128xbf16>, vector<16x128xf32> -> vector<16x128xf32>
    %c0_68 = arith.constant 0 : index
    %c0_69 = arith.constant 0 : index
    %189 = vector.load %arg17[%c0_68, %c0_69] : memref<1x128xf32, #tpu.memory_space<vmem>>, vector<1x128xf32>
    %190 = vector.broadcast %189 : vector<1x128xf32> to vector<16x128xf32>
    %191 = arith.addf %188, %190 : vector<16x128xf32>
    %c4_i32 = arith.constant 4 : i32
    %192 = vector.broadcast %c4_i32 : i32 to vector<16x1xi32>
    %193 = arith.cmpi sge, %39, %192 : vector<16x1xi32>
    %c4_i32_70 = arith.constant 4 : i32
    %194 = vector.broadcast %c4_i32_70 : i32 to vector<16x1xi32>
    %195 = arith.cmpi slt, %39, %194 : vector<16x1xi32>
    %196 = arith.mulf %185, %185 : vector<16x128xf32>
    %197 = arith.mulf %185, %196 : vector<16x128xf32>
    %cst_71 = arith.constant 4.471500e-02 : f32
    %198 = vector.broadcast %cst_71 : f32 to vector<16x128xf32>
    %199 = arith.mulf %198, %197 : vector<16x128xf32>
    %200 = arith.addf %185, %199 : vector<16x128xf32>
    %cst_72 = arith.constant 0.797884583 : f32
    %201 = vector.broadcast %cst_72 : f32 to vector<16x128xf32>
    %202 = arith.mulf %201, %200 : vector<16x128xf32>
    %203 = math.tanh %202 : vector<16x128xf32>
    %cst_73 = arith.constant 1.000000e+00 : f32
    %204 = vector.broadcast %cst_73 : f32 to vector<16x128xf32>
    %205 = arith.addf %204, %203 : vector<16x128xf32>
    %cst_74 = arith.constant 5.000000e-01 : f32
    %206 = vector.broadcast %cst_74 : f32 to vector<16x128xf32>
    %207 = arith.mulf %206, %205 : vector<16x128xf32>
    %208 = arith.mulf %185, %207 : vector<16x128xf32>
    %209 = arith.truncf %208 : vector<16x128xf32> to vector<16x128xbf16>
    %c0_75 = arith.constant 0 : index
    %c0_76 = arith.constant 0 : index
    %210 = vector.load %arg12[%c0_75, %c0_76] : memref<128x384xbf16, #tpu.memory_space<vmem>>, vector<128x384xbf16>
    %cst_77 = arith.constant dense<0.000000e+00> : vector<16x384xf32>
    %211 = tpu.matmul %209, %210, %cst_77 {dimension_numbers = #tpu.dot_dimension_numbers<[1], [0], [0], [1], [0, 0, 1, 1], [], []>} : vector<16x128xbf16>, vector<128x384xbf16>, vector<16x384xf32> -> vector<16x384xf32>
    %212 = vector.extract_strided_slice %211 {offsets = [0, 0], sizes = [16, 128], strides = [1, 1]} : vector<16x384xf32> to vector<16x128xf32>
    %c4_i32_78 = arith.constant 4 : i32
    %213 = tpu.dynamic_rotate %212 by %c4_i32_78 dim 0 : vector<16x128xf32>, i32 -> vector<16x128xf32>
    %214 = vector.extract_strided_slice %211 {offsets = [0, 128], sizes = [16, 128], strides = [1, 1]} : vector<16x384xf32> to vector<16x128xf32>
    %215 = vector.extract_strided_slice %211 {offsets = [0, 256], sizes = [16, 128], strides = [1, 1]} : vector<16x384xf32> to vector<16x128xf32>
    %c12_i32 = arith.constant 12 : i32
    %216 = tpu.dynamic_rotate %215 by %c12_i32 dim 0 : vector<16x128xf32>, i32 -> vector<16x128xf32>
    %cst_79 = arith.constant 0.000000e+00 : f32
    %217 = vector.shape_cast %193 : vector<16x1xi1> to vector<16x1xi1>
    %218 = vector.broadcast %217 : vector<16x1xi1> to vector<16x128xi1>
    %219 = vector.broadcast %cst_79 : f32 to vector<16x128xf32>
    %220 = arith.select %218, %213, %219 : vector<16x128xi1>, vector<16x128xf32>
    %221 = arith.addf %214, %220 : vector<16x128xf32>
    %cst_80 = arith.constant 0.000000e+00 : f32
    %222 = vector.shape_cast %195 : vector<16x1xi1> to vector<16x1xi1>
    %223 = vector.broadcast %222 : vector<16x1xi1> to vector<16x128xi1>
    %224 = vector.broadcast %cst_80 : f32 to vector<16x128xf32>
    %225 = arith.select %223, %216, %224 : vector<16x128xi1>, vector<16x128xf32>
    %226 = arith.addf %221, %225 : vector<16x128xf32>
    %c0_81 = arith.constant 0 : index
    %c0_82 = arith.constant 0 : index
    %227 = vector.load %arg13[%c0_81, %c0_82] : memref<1x128xf32, #tpu.memory_space<vmem>>, vector<1x128xf32>
    %228 = vector.broadcast %227 : vector<1x128xf32> to vector<16x128xf32>
    %229 = arith.addf %226, %228 : vector<16x128xf32>
    %230 = arith.mulf %229, %229 : vector<16x128xf32>
    %231 = arith.mulf %229, %230 : vector<16x128xf32>
    %cst_83 = arith.constant 4.471500e-02 : f32
    %232 = vector.broadcast %cst_83 : f32 to vector<16x128xf32>
    %233 = arith.mulf %232, %231 : vector<16x128xf32>
    %234 = arith.addf %229, %233 : vector<16x128xf32>
    %cst_84 = arith.constant 0.797884583 : f32
    %235 = vector.broadcast %cst_84 : f32 to vector<16x128xf32>
    %236 = arith.mulf %235, %234 : vector<16x128xf32>
    %237 = math.tanh %236 : vector<16x128xf32>
    %cst_85 = arith.constant 1.000000e+00 : f32
    %238 = vector.broadcast %cst_85 : f32 to vector<16x128xf32>
    %239 = arith.addf %238, %237 : vector<16x128xf32>
    %cst_86 = arith.constant 5.000000e-01 : f32
    %240 = vector.broadcast %cst_86 : f32 to vector<16x128xf32>
    %241 = arith.mulf %240, %239 : vector<16x128xf32>
    %242 = arith.mulf %229, %241 : vector<16x128xf32>
    %243 = arith.truncf %242 : vector<16x128xf32> to vector<16x128xbf16>
    %c0_87 = arith.constant 0 : index
    %c0_88 = arith.constant 0 : index
    %244 = vector.load %arg14[%c0_87, %c0_88] : memref<128x384xbf16, #tpu.memory_space<vmem>>, vector<128x384xbf16>
    %cst_89 = arith.constant dense<0.000000e+00> : vector<16x384xf32>
    %245 = tpu.matmul %243, %244, %cst_89 {dimension_numbers = #tpu.dot_dimension_numbers<[1], [0], [0], [1], [0, 0, 1, 1], [], []>} : vector<16x128xbf16>, vector<128x384xbf16>, vector<16x384xf32> -> vector<16x384xf32>
    %246 = vector.extract_strided_slice %245 {offsets = [0, 0], sizes = [16, 128], strides = [1, 1]} : vector<16x384xf32> to vector<16x128xf32>
    %c4_i32_90 = arith.constant 4 : i32
    %247 = tpu.dynamic_rotate %246 by %c4_i32_90 dim 0 : vector<16x128xf32>, i32 -> vector<16x128xf32>
    %248 = vector.extract_strided_slice %245 {offsets = [0, 128], sizes = [16, 128], strides = [1, 1]} : vector<16x384xf32> to vector<16x128xf32>
    %249 = vector.extract_strided_slice %245 {offsets = [0, 256], sizes = [16, 128], strides = [1, 1]} : vector<16x384xf32> to vector<16x128xf32>
    %c12_i32_91 = arith.constant 12 : i32
    %250 = tpu.dynamic_rotate %249 by %c12_i32_91 dim 0 : vector<16x128xf32>, i32 -> vector<16x128xf32>
    %cst_92 = arith.constant 0.000000e+00 : f32
    %251 = vector.shape_cast %193 : vector<16x1xi1> to vector<16x1xi1>
    %252 = vector.broadcast %251 : vector<16x1xi1> to vector<16x128xi1>
    %253 = vector.broadcast %cst_92 : f32 to vector<16x128xf32>
    %254 = arith.select %252, %247, %253 : vector<16x128xi1>, vector<16x128xf32>
    %255 = arith.addf %248, %254 : vector<16x128xf32>
    %cst_93 = arith.constant 0.000000e+00 : f32
    %256 = vector.shape_cast %195 : vector<16x1xi1> to vector<16x1xi1>
    %257 = vector.broadcast %256 : vector<16x1xi1> to vector<16x128xi1>
    %258 = vector.broadcast %cst_93 : f32 to vector<16x128xf32>
    %259 = arith.select %257, %250, %258 : vector<16x128xi1>, vector<16x128xf32>
    %260 = arith.addf %255, %259 : vector<16x128xf32>
    %c0_94 = arith.constant 0 : index
    %c0_95 = arith.constant 0 : index
    %261 = vector.load %arg15[%c0_94, %c0_95] : memref<1x128xf32, #tpu.memory_space<vmem>>, vector<1x128xf32>
    %262 = vector.broadcast %261 : vector<1x128xf32> to vector<16x128xf32>
    %263 = arith.addf %260, %262 : vector<16x128xf32>
    %264 = arith.addf %263, %191 : vector<16x128xf32>
    %265 = arith.truncf %264 : vector<16x128xf32> to vector<16x128xbf16>
    %c0_96 = arith.constant 0 : index
    %c0_97 = arith.constant 0 : index
    %266 = vector.load %arg18[%c0_96, %c0_97] : memref<16x128xbf16, #tpu.memory_space<vmem>>, vector<16x128xbf16>
    tpu.vector_store %arg18[%c0_96, %c0_97], %265 {strides = array<i32>} : memref<16x128xbf16, #tpu.memory_space<vmem>>, vector<16x128xbf16>,
    return
  }
  func.func @transform_0(%arg0: i32) -> (i32, i32) {
    %c0_i32 = arith.constant 0 : i32
    %c0_i32_0 = arith.constant 0 : i32
    return %arg0, %c0_i32 : i32, i32
  }
  func.func @transform_1(%arg0: i32) -> (i32, i32) {
    %c0_i32 = arith.constant 0 : i32
    %c0_i32_0 = arith.constant 0 : i32
    %c0_i32_1 = arith.constant 0 : i32
    return %c0_i32, %c0_i32_0 : i32, i32
  }
  func.func @transform_2(%arg0: i32) -> (i32, i32) {
    %c0_i32 = arith.constant 0 : i32
    %c0_i32_0 = arith.constant 0 : i32
    %c0_i32_1 = arith.constant 0 : i32
    return %c0_i32, %c0_i32_0 : i32, i32
  }
  func.func @transform_3(%arg0: i32) -> (i32, i32) {
    %c0_i32 = arith.constant 0 : i32
    %c0_i32_0 = arith.constant 0 : i32
    %c0_i32_1 = arith.constant 0 : i32
    return %c0_i32, %c0_i32_0 : i32, i32
  }
  func.func @transform_4(%arg0: i32) -> (i32, i32) {
    %c0_i32 = arith.constant 0 : i32
    %c0_i32_0 = arith.constant 0 : i32
    %c0_i32_1 = arith.constant 0 : i32
    return %c0_i32, %c0_i32_0 : i32, i32
  }
  func.func @transform_5(%arg0: i32) -> (i32, i32) {
    %c0_i32 = arith.constant 0 : i32
    %c0_i32_0 = arith.constant 0 : i32
    %c0_i32_1 = arith.constant 0 : i32
    return %c0_i32, %c0_i32_0 : i32, i32
  }
  func.func @transform_6(%arg0: i32) -> (i32, i32) {
    %c0_i32 = arith.constant 0 : i32
    %c0_i32_0 = arith.constant 0 : i32
    %c0_i32_1 = arith.constant 0 : i32
    return %c0_i32, %c0_i32_0 : i32, i32
  }
  func.func @transform_7(%arg0: i32) -> (i32, i32) {
    %c0_i32 = arith.constant 0 : i32
    %c0_i32_0 = arith.constant 0 : i32
    %c0_i32_1 = arith.constant 0 : i32
    return %c0_i32, %c0_i32_0 : i32, i32
  }
  func.func @transform_8(%arg0: i32) -> (i32, i32) {
    %c0_i32 = arith.constant 0 : i32
    %c0_i32_0 = arith.constant 0 : i32
    %c0_i32_1 = arith.constant 0 : i32
    return %c0_i32, %c0_i32_0 : i32, i32
  }
  func.func @transform_9(%arg0: i32) -> (i32, i32) {
    %c0_i32 = arith.constant 0 : i32
    %c0_i32_0 = arith.constant 0 : i32
    %c0_i32_1 = arith.constant 0 : i32
    return %c0_i32, %c0_i32_0 : i32, i32
  }
  func.func @transform_10(%arg0: i32) -> (i32, i32) {
    %c0_i32 = arith.constant 0 : i32
    %c0_i32_0 = arith.constant 0 : i32
    %c0_i32_1 = arith.constant 0 : i32
    return %c0_i32, %c0_i32_0 : i32, i32
  }
  func.func @transform_11(%arg0: i32) -> (i32, i32) {
    %c0_i32 = arith.constant 0 : i32
    %c0_i32_0 = arith.constant 0 : i32
    %c0_i32_1 = arith.constant 0 : i32
    return %c0_i32, %c0_i32_0 : i32, i32
  }
  func.func @transform_12(%arg0: i32) -> (i32, i32) {
    %c0_i32 = arith.constant 0 : i32
    %c0_i32_0 = arith.constant 0 : i32
    %c0_i32_1 = arith.constant 0 : i32
    return %c0_i32, %c0_i32_0 : i32, i32
  }
  func.func @transform_13(%arg0: i32) -> (i32, i32) {
    %c0_i32 = arith.constant 0 : i32
    %c0_i32_0 = arith.constant 0 : i32
    %c0_i32_1 = arith.constant 0 : i32
    return %c0_i32, %c0_i32_0 : i32, i32
  }
  func.func @transform_14(%arg0: i32) -> (i32, i32) {
    %c0_i32 = arith.constant 0 : i32
    %c0_i32_0 = arith.constant 0 : i32
    %c0_i32_1 = arith.constant 0 : i32
    return %c0_i32, %c0_i32_0 : i32, i32
  }
  func.func @transform_15(%arg0: i32) -> (i32, i32) {
    %c0_i32 = arith.constant 0 : i32
    %c0_i32_0 = arith.constant 0 : i32
    %c0_i32_1 = arith.constant 0 : i32
    return %c0_i32, %c0_i32_0 : i32, i32
  }
  func.func @transform_16(%arg0: i32) -> (i32, i32) {
    %c0_i32 = arith.constant 0 : i32
    %c0_i32_0 = arith.constant 0 : i32
    %c0_i32_1 = arith.constant 0 : i32
    return %c0_i32, %c0_i32_0 : i32, i32
  }
  func.func @transform_17(%arg0: i32) -> (i32, i32) {
    %c0_i32 = arith.constant 0 : i32
    %c0_i32_0 = arith.constant 0 : i32
    return %arg0, %c0_i32 : i32, i32
  }
}

</mosaic_0001>

<bundles_post_ra>
// kernel: tpu_custom_call.1
= control target key start
LH: loop header
LB: loop body
LE: loop exit
PB: predicated region body
PF: predicated region fallthrough
CT: control target
= control target key end

     0   :  { %s3990_s0 = inlined_call_operand.hbm [shape: f32[16,4], index: 0, kind: input, shape index: {}]   ;;  %s3991_s1 = inlined_call_operand.hbm [shape: bf16[4,128], index: 1, kind: input, shape index: {}]   ;;  %s3992_s2 = inlined_call_operand.hbm [shape: f32[1,128], index: 2, kind: input, shape index: {}]   ;;  %s3993_s3 = inlined_call_operand.hbm [shape: bf16[128,384], index: 3, kind: input, shape index: {}]   ;;  %s3994_s4 = inlined_call_operand.hbm [shape: f32[1,128], index: 4, kind: input, shape index: {}]   ;;  %s3995_s5 = inlined_call_operand.hbm [shape: bf16[128,384], index: 5, kind: input, shape index: {}]   ;;  %s3996_s6 = inlined_call_operand.hbm [shape: f32[1,128], index: 6, kind: input, shape index: {}]   ;;  %s3997_s7 = inlined_call_operand.hbm [shape: bf16[128,384], index: 7, kind: input, shape index: {}]   ;;  %s3998_s8 = inlined_call_operand.hbm [shape: f32[1,128], index: 8, kind: input, shape index: {}]   ;;  %s3999_s9 = inlined_call_operand.hbm [shape: bf16[128,384], index: 9, kind: input, shape index: {}]   ;;  %s4000_s10 = inlined_call_operand.hbm [shape: f32[1,128], index: 10, kind: input, shape index: {}]   ;;  %s4001_s11 = inlined_call_operand.hbm [shape: bf16[128,384], index: 11, kind: input, shape index: {}]   ;;  %s4002_s12 = inlined_call_operand.hbm [shape: f32[1,128], index: 12, kind: input, shape index: {}]   ;;  %s4003_s13 = inlined_call_operand.hbm [shape: bf16[128,384], index: 13, kind: input, shape index: {}]   ;;  %s4004_s14 = inlined_call_operand.hbm [shape: f32[1,128], index: 14, kind: input, shape index: {}]   ;;  %s4005_s15 = inlined_call_operand.hbm [shape: bf16[128,128], index: 15, kind: input, shape index: {}]   ;;  %s4006_s16 = inlined_call_operand.hbm [shape: f32[1,128], index: 16, kind: input, shape index: {}]   ;;  %s4007_s17 = inlined_call_operand.hbm [shape: bf16[16,128], index: 17, kind: output, shape index: {}]  }
   0x1   :  { %4011 = sst [smem:[#allocation40_spill]] %s3990_s0 }
   0x2   :  { %4012 = sst [smem:[#allocation41_spill]] %s3991_s1 }
   0x3   :  { %4013 = sst [smem:[#allocation42_spill]] %s4007_s17 }
   0x4   :  { %22 = vsyncpa [#allocation3], 0 }
   0x5   :  { %23 = vsyncpa [#allocation6], 0 }
   0x6   :  { %24 = vsyncpa [#allocation9], 0 }
   0x7   :  { %25 = vsyncpa [#allocation12], 0 }
   0x8   :  { %26 = vsyncpa [#allocation15], 0 }
   0x9   :  { %27 = vsyncpa [#allocation18], 0 }
   0xa   :  { %28 = vsyncpa [#allocation21], 0 }
   0xb   :  { %29 = vsyncpa [#allocation24], 0 }
   0xc   :  { %30 = vsyncpa [#allocation27], 0 }
   0xd   :  { %31 = vsyncpa [#allocation4], 0  ;;  %s3348_s24 = smov [#allocation5]   ;;  %s3349_s26 = smov [#allocation8]  }
   0xe   :  { %s50_s25 = sshll.u32 %s3348_s24, 4  ;;  %s69_s27 = sshll.u32 %s3349_s26, 4  ;;  %s51_s25 = int_to_ptr.vmem [resolvable:$true] %s50_s25  ;;  %s3465_s27 = int_to_ptr.vmem [resolvable:$true] %s69_s27 }
   0xf   :  { %s4014_s0 = sld [smem:[#allocation41_spill]] }
  0x15   :  { %s2932_s30 = scalar_lea.hbm %s4014_s0, 32 }
  0x16   :  { %p2933_p0 = scmp.ne.s32.totalorder %s4014_s0, %s2932_s30  ;;  %p2936_p1 = scmp.lt.u32.totalorder %s2932_s30, %s4014_s0 }
  0x18   :  { %p2938_p2 = pnand %p2936_p1, %p2933_p0 }
  0x1a   :  { %2941 = shalt.err (!%p2938_p2)
}
  0x1b   :  { %s2942_s21 = scalar_lea.vmem %s51_s25, 32  ;;  %p2947_p4 = scmp.lt.s32.totalorder %s51_s25, %s51_s25 }
  0x1c   :  { %p2943_p3 = scmp.ne.s32.totalorder %s51_s25, %s2942_s21  ;;  %p2948_p5 = scmp.lt.s32.totalorder %s2942_s21, %s2942_s21 }
  0x1e   :  { %p2949_p6 = por %p2948_p5, %p2947_p4 }
  0x20   :  { %p2950_p7 = pnand %p2949_p6, %p2943_p3 }
  0x22   :  { %2953 = shalt.err (!%p2950_p7)
}
  0x23   :  { %53 = dma.hbm_to_vmem [thread:$0]  %s4014_s0, 32, %s51_s25, [#allocation6]  }
  0x24   :  { %s2954_s28 = scalar_lea.hbm %s3993_s3, 3072 }
  0x25   :  { %p2955_p8 = scmp.ne.s32.totalorder %s3993_s3, %s2954_s28  ;;  %p2958_p9 = scmp.lt.u32.totalorder %s2954_s28, %s3993_s3 }
  0x27   :  { %p2960_p10 = pnand %p2958_p9, %p2955_p8 }
  0x29   :  { %2963 = shalt.err (!%p2960_p10)
}
  0x2a   :  { %s2964_s1 = scalar_lea.vmem %s3465_s27, 3072  ;;  %p2969_p12 = scmp.lt.s32.totalorder %s3465_s27, %s3465_s27 }
  0x2b   :  { %p2965_p11 = scmp.ne.s32.totalorder %s3465_s27, %s2964_s1  ;;  %p2970_p13 = scmp.lt.s32.totalorder %s2964_s1, %s2964_s1 }
  0x2d   :  { %p2971_p0 = por %p2970_p13, %p2969_p12 }
  0x2f   :  { %p2972_p1 = pnand %p2971_p0, %p2965_p11 }
  0x31   :  { %2975 = shalt.err (!%p2972_p1)
}
  0x32   :  { %s3350_s25 = smov 192   ;;  %s3351_s0 = smov 12  }
  0x33   :  { %75 = dma.hbm_to_vmem [thread:$0]  %s3993_s3, 3072, %s3465_s27, [#allocation9], %s3350_s25, %s3350_s25, %s3351_s0  }
  0x34   :  { %s3352_s22 = smov [#allocation11]   ;;  %s3353_s24 = smov [#allocation14]  }
  0x35   :  { %s91_s23 = sshll.u32 %s3352_s22, 4  ;;  %s113_s26 = sshll.u32 %s3353_s24, 4  ;;  %s92_s23 = int_to_ptr.vmem [resolvable:$true] %s91_s23  ;;  %s3499_s26 = int_to_ptr.vmem [resolvable:$true] %s113_s26 }
  0x36   :  { %s2976_s18 = scalar_lea.hbm %s3995_s5, 3072 }
  0x37   :  { %p2977_p2 = scmp.ne.s32.totalorder %s3995_s5, %s2976_s18  ;;  %p2980_p3 = scmp.lt.u32.totalorder %s2976_s18, %s3995_s5 }
  0x39   :  { %p2982_p4 = pnand %p2980_p3, %p2977_p2 }
  0x3b   :  { %2985 = shalt.err (!%p2982_p4)
}
  0x3c   :  { %s2986_s3 = scalar_lea.vmem %s92_s23, 3072  ;;  %p2991_p6 = scmp.lt.s32.totalorder %s92_s23, %s92_s23 }
  0x3d   :  { %p2987_p5 = scmp.ne.s32.totalorder %s92_s23, %s2986_s3  ;;  %p2992_p7 = scmp.lt.s32.totalorder %s2986_s3, %s2986_s3 }
  0x3f   :  { %p2993_p8 = por %p2992_p7, %p2991_p6 }
  0x41   :  { %p2994_p9 = pnand %p2993_p8, %p2987_p5 }
  0x43   :  { %2997 = shalt.err (!%p2994_p9)
}
  0x44   :  { %97 = dma.hbm_to_vmem [thread:$0]  %s3995_s5, 3072, %s92_s23, [#allocation12], %s3350_s25, %s3350_s25, %s3351_s0  }
  0x45   :  { %s2998_s17 = scalar_lea.hbm %s3997_s7, 3072 }
  0x46   :  { %p2999_p10 = scmp.ne.s32.totalorder %s3997_s7, %s2998_s17  ;;  %p3002_p11 = scmp.lt.u32.totalorder %s2998_s17, %s3997_s7 }
  0x48   :  { %p3004_p12 = pnand %p3002_p11, %p2999_p10 }
  0x4a   :  { %3007 = shalt.err (!%p3004_p12)
}
  0x4b   :  { %s3008_s30 = scalar_lea.vmem %s3499_s26, 3072  ;;  %p3013_p0 = scmp.lt.s32.totalorder %s3499_s26, %s3499_s26 }
  0x4c   :  { %p3009_p13 = scmp.ne.s32.totalorder %s3499_s26, %s3008_s30  ;;  %p3014_p1 = scmp.lt.s32.totalorder %s3008_s30, %s3008_s30 }
  0x4e   :  { %p3015_p2 = por %p3014_p1, %p3013_p0 }
  0x50   :  { %p3016_p3 = pnand %p3015_p2, %p3009_p13 }
  0x52   :  { %3019 = shalt.err (!%p3016_p3)
}
  0x53   :  { %119 = dma.hbm_to_vmem [thread:$0]  %s3997_s7, 3072, %s3499_s26, [#allocation15], %s3350_s25, %s3350_s25, %s3351_s0  }
  0x54   :  { %s3354_s19 = smov [#allocation17]   ;;  %s3355_s3 = smov [#allocation20]  }
  0x55   :  { %s135_s1 = sshll.u32 %s3354_s19, 4  ;;  %s157_s27 = sshll.u32 %s3355_s3, 4  ;;  %s136_s1 = int_to_ptr.vmem [resolvable:$true] %s135_s1  ;;  %s3536_s27 = int_to_ptr.vmem [resolvable:$true] %s157_s27 }
  0x56   :  { %s3020_s22 = scalar_lea.hbm %s3999_s9, 3072 }
  0x57   :  { %p3021_p4 = scmp.ne.s32.totalorder %s3999_s9, %s3020_s22  ;;  %p3024_p5 = scmp.lt.u32.totalorder %s3020_s22, %s3999_s9 }
  0x59   :  { %p3026_p6 = pnand %p3024_p5, %p3021_p4 }
  0x5b   :  { %3029 = shalt.err (!%p3026_p6)
}
  0x5c   :  { %s3030_s7 = scalar_lea.vmem %s136_s1, 3072  ;;  %p3035_p8 = scmp.lt.s32.totalorder %s136_s1, %s136_s1 }
  0x5d   :  { %p3031_p7 = scmp.ne.s32.totalorder %s136_s1, %s3030_s7  ;;  %p3036_p9 = scmp.lt.s32.totalorder %s3030_s7, %s3030_s7 }
  0x5f   :  { %p3037_p10 = por %p3036_p9, %p3035_p8 }
  0x61   :  { %p3038_p11 = pnand %p3037_p10, %p3031_p7 }
  0x63   :  { %3041 = shalt.err (!%p3038_p11)
}
  0x64   :  { %141 = dma.hbm_to_vmem [thread:$0]  %s3999_s9, 3072, %s136_s1, [#allocation18], %s3350_s25, %s3350_s25, %s3351_s0  }
  0x65   :  { %s3042_s23 = scalar_lea.hbm %s4001_s11, 3072 }
  0x66   :  { %p3043_p12 = scmp.ne.s32.totalorder %s4001_s11, %s3042_s23  ;;  %p3046_p13 = scmp.lt.u32.totalorder %s3042_s23, %s4001_s11 }
  0x68   :  { %p3048_p0 = pnand %p3046_p13, %p3043_p12 }
  0x6a   :  { %3051 = shalt.err (!%p3048_p0)
}
  0x6b   :  { %s3052_s22 = scalar_lea.vmem %s3536_s27, 3072  ;;  %p3057_p2 = scmp.lt.s32.totalorder %s3536_s27, %s3536_s27 }
  0x6c   :  { %p3053_p1 = scmp.ne.s32.totalorder %s3536_s27, %s3052_s22  ;;  %p3058_p3 = scmp.lt.s32.totalorder %s3052_s22, %s3052_s22 }
  0x6e   :  { %p3059_p4 = por %p3058_p3, %p3057_p2 }
  0x70   :  { %p3060_p5 = pnand %p3059_p4, %p3053_p1 }
  0x72   :  { %3063 = shalt.err (!%p3060_p5)
}
  0x73   :  { %163 = dma.hbm_to_vmem [thread:$0]  %s4001_s11, 3072, %s3536_s27, [#allocation21], %s3350_s25, %s3350_s25, %s3351_s0  }
  0x74   :  { %s3356_s17 = smov [#allocation23]   ;;  %s3357_s28 = smov [#allocation26]  }
  0x75   :  { %s179_s24 = sshll.u32 %s3356_s17, 4  ;;  %s201_s29 = sshll.u32 %s3357_s28, 4  ;;  %s180_s24 = int_to_ptr.vmem [resolvable:$true] %s179_s24  ;;  %s3573_s29 = int_to_ptr.vmem [resolvable:$true] %s201_s29 }
  0x76   :  { %s3064_s18 = scalar_lea.hbm %s4003_s13, 3072 }
  0x77   :  { %p3065_p6 = scmp.ne.s32.totalorder %s4003_s13, %s3064_s18  ;;  %p3068_p7 = scmp.lt.u32.totalorder %s3064_s18, %s4003_s13 }
  0x79   :  { %p3070_p8 = pnand %p3068_p7, %p3065_p6 }
  0x7b   :  { %3073 = shalt.err (!%p3070_p8)
}
  0x7c   :  { %s3074_s11 = scalar_lea.vmem %s180_s24, 3072  ;;  %p3079_p10 = scmp.lt.s32.totalorder %s180_s24, %s180_s24 }
  0x7d   :  { %p3075_p9 = scmp.ne.s32.totalorder %s180_s24, %s3074_s11  ;;  %p3080_p11 = scmp.lt.s32.totalorder %s3074_s11, %s3074_s11 }
  0x7f   :  { %p3081_p12 = por %p3080_p11, %p3079_p10 }
  0x81   :  { %p3082_p13 = pnand %p3081_p12, %p3075_p9 }
  0x83   :  { %3085 = shalt.err (!%p3082_p13)
}
  0x84   :  { %185 = dma.hbm_to_vmem [thread:$0]  %s4003_s13, 3072, %s180_s24, [#allocation24], %s3350_s25, %s3350_s25, %s3351_s0  }
  0x85   :  { %s3086_s22 = scalar_lea.hbm %s4005_s15, 1024 }
  0x86   :  { %p3087_p0 = scmp.ne.s32.totalorder %s4005_s15, %s3086_s22  ;;  %p3090_p1 = scmp.lt.u32.totalorder %s3086_s22, %s4005_s15 }
  0x88   :  { %p3092_p2 = pnand %p3090_p1, %p3087_p0 }
  0x8a   :  { %3095 = shalt.err (!%p3092_p2)
}
  0x8b   :  { %s3096_s7 = scalar_lea.vmem %s3573_s29, 1024  ;;  %p3101_p4 = scmp.lt.s32.totalorder %s3573_s29, %s3573_s29 }
  0x8c   :  { %p3097_p3 = scmp.ne.s32.totalorder %s3573_s29, %s3096_s7  ;;  %p3102_p5 = scmp.lt.s32.totalorder %s3096_s7, %s3096_s7 }
  0x8e   :  { %p3103_p6 = por %p3102_p5, %p3101_p4 }
  0x90   :  { %p3104_p7 = pnand %p3103_p6, %p3097_p3 }
  0x92   :  { %3107 = shalt.err (!%p3104_p7)
}
  0x93   :  { %s3358_s13 = smov 64   ;;  %s3359_s25 = smov 4  }
  0x94   :  { %207 = dma.hbm_to_vmem [thread:$0]  %s4005_s15, 1024, %s3573_s29, [#allocation27], %s3358_s13, %s3358_s13, %s3359_s25  }
  0x95   :  { %s3360_s26 = smov [#allocation2]   ;;  %s4015_s23 = sld [smem:[#allocation40_spill]] }
  0x96   :  { %s37_s18 = sshll.u32 %s3360_s26, 4  ;;  %s38_s18 = int_to_ptr.vmem [resolvable:$true] %s37_s18 }
  0x9b   :  { %s3108_s19 = scalar_lea.hbm %s4015_s23, 256 }
  0x9c   :  { %p3109_p8 = scmp.ne.s32.totalorder %s4015_s23, %s3108_s19  ;;  %p3112_p9 = scmp.lt.u32.totalorder %s3108_s19, %s4015_s23 }
  0x9e   :  { %p3114_p10 = pnand %p3112_p9, %p3109_p8 }
  0xa0   :  { %3117 = shalt.err (!%p3114_p10)
}
  0xa1   :  { %s3118_s21 = scalar_lea.vmem %s38_s18, 256  ;;  %p3123_p12 = scmp.lt.s32.totalorder %s38_s18, %s38_s18 }
  0xa2   :  { %p3119_p11 = scmp.ne.s32.totalorder %s38_s18, %s3118_s21  ;;  %p3124_p13 = scmp.lt.s32.totalorder %s3118_s21, %s3118_s21 }
  0xa4   :  { %p3125_p0 = por %p3124_p13, %p3123_p12 }
  0xa6   :  { %p3126_p1 = pnand %p3125_p0, %p3119_p11 }
  0xa8   :  { %3129 = shalt.err (!%p3126_p1)
}
  0xa9   :  { %s3361_s15 = smov 128   ;;  %s3362_s29 = smov 8  }
  0xaa   :  { %43 = dma.hbm_to_vmem [thread:$0]  %s4015_s23, 256, %s38_s18, [#allocation3], %s3361_s15, %s3361_s15, %s3362_s29  }
  0xab   :  { %s3363_s1 = smov [#allocation7]   ;;  %s3364_s28 = smov [#allocation10]  }
  0xac   :  { %s60_s17 = sshll.u32 %s3363_s1, 4  ;;  %s82_s7 = sshll.u32 %s3364_s28, 4  ;;  %s61_s17 = int_to_ptr.vmem [resolvable:$true] %s60_s17  ;;  %s83_s7 = int_to_ptr.vmem [resolvable:$true] %s82_s7 }
  0xad   :  { %s3130_s26 = scalar_lea.hbm %s3992_s2, 16 }
  0xae   :  { %p3131_p2 = scmp.ne.s32.totalorder %s3992_s2, %s3130_s26  ;;  %p3134_p3 = scmp.lt.u32.totalorder %s3130_s26, %s3992_s2 }
  0xb0   :  { %p3136_p4 = pnand %p3134_p3, %p3131_p2 }
  0xb2   :  { %3139 = shalt.err (!%p3136_p4)
}
  0xb3   :  { %s3140_s18 = scalar_lea.vmem %s61_s17, 16  ;;  %s3144_s23 = scalar_lea.vmem %s61_s17, 32 }
  0xb4   :  { %p3141_p5 = scmp.ne.s32.totalorder %s61_s17, %s3140_s18  ;;  %p3145_p6 = scmp.lt.s32.totalorder %s61_s17, %s61_s17 }
  0xb5   :  { %p3146_p7 = scmp.lt.s32.totalorder %s3144_s23, %s3140_s18 }
  0xb7   :  { %p3147_p8 = por %p3146_p7, %p3145_p6 }
  0xb9   :  { %p3148_p9 = pnand %p3147_p8, %p3141_p5 }
  0xbb   :  { %3151 = shalt.err (!%p3148_p9)
}
  0xbc   :  { %63 = dma.hbm_to_vmem [thread:$0]  %s3992_s2, 16, %s61_s17, [#allocation6]  }
  0xbd   :  { %s3152_s15 = scalar_lea.hbm %s3994_s4, 16 }
  0xbe   :  { %p3153_p10 = scmp.ne.s32.totalorder %s3994_s4, %s3152_s15  ;;  %p3156_p11 = scmp.lt.u32.totalorder %s3152_s15, %s3994_s4 }
  0xc0   :  { %p3158_p12 = pnand %p3156_p11, %p3153_p10 }
  0xc2   :  { %3161 = shalt.err (!%p3158_p12)
}
  0xc3   :  { %s3162_s28 = scalar_lea.vmem %s83_s7, 16  ;;  %s3166_s0 = scalar_lea.vmem %s83_s7, 32 }
  0xc4   :  { %p3163_p13 = scmp.ne.s32.totalorder %s83_s7, %s3162_s28  ;;  %p3167_p0 = scmp.lt.s32.totalorder %s83_s7, %s83_s7 }
  0xc5   :  { %p3168_p1 = scmp.lt.s32.totalorder %s3166_s0, %s3162_s28 }
  0xc7   :  { %p3169_p2 = por %p3168_p1, %p3167_p0 }
  0xc9   :  { %p3170_p3 = pnand %p3169_p2, %p3163_p13 }
  0xcb   :  { %3173 = shalt.err (!%p3170_p3)
}
  0xcc   :  { %85 = dma.hbm_to_vmem [thread:$0]  %s3994_s4, 16, %s83_s7, [#allocation9]  }
  0xcd   :  { %s3365_s24 = smov [#allocation13]   ;;  %s3366_s30 = smov [#allocation16]  }
  0xce   :  { %s104_s26 = sshll.u32 %s3365_s24, 4  ;;  %s126_s5 = sshll.u32 %s3366_s30, 4  ;;  %s105_s26 = int_to_ptr.vmem [resolvable:$true] %s104_s26  ;;  %s127_s5 = int_to_ptr.vmem [resolvable:$true] %s126_s5 }
  0xcf   :  { %s3174_s18 = scalar_lea.hbm %s3996_s6, 16 }
  0xd0   :  { %p3175_p4 = scmp.ne.s32.totalorder %s3996_s6, %s3174_s18  ;;  %p3178_p5 = scmp.lt.u32.totalorder %s3174_s18, %s3996_s6 }
  0xd2   :  { %p3180_p6 = pnand %p3178_p5, %p3175_p4 }
  0xd4   :  { %3183 = shalt.err (!%p3180_p6)
}
  0xd5   :  { %s3184_s4 = scalar_lea.vmem %s105_s26, 16  ;;  %s3188_s7 = scalar_lea.vmem %s105_s26, 32 }
  0xd6   :  { %p3185_p7 = scmp.ne.s32.totalorder %s105_s26, %s3184_s4  ;;  %p3189_p8 = scmp.lt.s32.totalorder %s105_s26, %s105_s26 }
  0xd7   :  { %p3190_p9 = scmp.lt.s32.totalorder %s3188_s7, %s3184_s4 }
  0xd9   :  { %p3191_p10 = por %p3190_p9, %p3189_p8 }
  0xdb   :  { %p3192_p11 = pnand %p3191_p10, %p3185_p7 }
  0xdd   :  { %3195 = shalt.err (!%p3192_p11)
}
  0xde   :  { %107 = dma.hbm_to_vmem [thread:$0]  %s3996_s6, 16, %s105_s26, [#allocation12]  }
  0xdf   :  { %s3196_s9 = scalar_lea.hbm %s3998_s8, 16 }
  0xe0   :  { %p3197_p12 = scmp.ne.s32.totalorder %s3998_s8, %s3196_s9  ;;  %p3200_p13 = scmp.lt.u32.totalorder %s3196_s9, %s3998_s8 }
  0xe2   :  { %p3202_p0 = pnand %p3200_p13, %p3197_p12 }
  0xe4   :  { %3205 = shalt.err (!%p3202_p0)
}
  0xe5   :  { %s3206_s17 = scalar_lea.vmem %s127_s5, 16  ;;  %s3210_s24 = scalar_lea.vmem %s127_s5, 32 }
  0xe6   :  { %p3207_p1 = scmp.ne.s32.totalorder %s127_s5, %s3206_s17  ;;  %p3211_p2 = scmp.lt.s32.totalorder %s127_s5, %s127_s5 }
  0xe7   :  { %p3212_p3 = scmp.lt.s32.totalorder %s3210_s24, %s3206_s17 }
  0xe9   :  { %p3213_p4 = por %p3212_p3, %p3211_p2 }
  0xeb   :  { %p3214_p5 = pnand %p3213_p4, %p3207_p1 }
  0xed   :  { %3217 = shalt.err (!%p3214_p5)
}
  0xee   :  { %129 = dma.hbm_to_vmem [thread:$0]  %s3998_s8, 16, %s127_s5, [#allocation15]  }
  0xef   :  { %s3367_s30 = smov [#allocation19]   ;;  %s3368_s11 = smov [#allocation22]  }
  0xf0   :  { %s148_s19 = sshll.u32 %s3367_s30, 4  ;;  %s170_s18 = sshll.u32 %s3368_s11, 4  ;;  %s149_s19 = int_to_ptr.vmem [resolvable:$true] %s148_s19  ;;  %s171_s18 = int_to_ptr.vmem [resolvable:$true] %s170_s18 }
  0xf1   :  { %s3218_s3 = scalar_lea.hbm %s4000_s10, 16 }
  0xf2   :  { %p3219_p6 = scmp.ne.s32.totalorder %s4000_s10, %s3218_s3  ;;  %p3222_p7 = scmp.lt.u32.totalorder %s3218_s3, %s4000_s10 }
  0xf4   :  { %p3224_p8 = pnand %p3222_p7, %p3219_p6 }
  0xf6   :  { %3227 = shalt.err (!%p3224_p8)
}
  0xf7   :  { %s3228_s8 = scalar_lea.vmem %s149_s19, 16  ;;  %s3232_s5 = scalar_lea.vmem %s149_s19, 32 }
  0xf8   :  { %p3229_p9 = scmp.ne.s32.totalorder %s149_s19, %s3228_s8  ;;  %p3233_p10 = scmp.lt.s32.totalorder %s149_s19, %s149_s19 }
  0xf9   :  { %p3234_p11 = scmp.lt.s32.totalorder %s3232_s5, %s3228_s8 }
  0xfb   :  { %p3235_p12 = por %p3234_p11, %p3233_p10 }
  0xfd   :  { %p3236_p13 = pnand %p3235_p12, %p3229_p9 }
  0xff   :  { %3239 = shalt.err (!%p3236_p13)
}
 0x100   :  { %151 = dma.hbm_to_vmem [thread:$0]  %s4000_s10, 16, %s149_s19, [#allocation18]  }
 0x101   :  { %s3240_s1 = scalar_lea.hbm %s4002_s12, 16 }
 0x102   :  { %p3241_p0 = scmp.ne.s32.totalorder %s4002_s12, %s3240_s1  ;;  %p3244_p1 = scmp.lt.u32.totalorder %s3240_s1, %s4002_s12 }
 0x104   :  { %p3246_p2 = pnand %p3244_p1, %p3241_p0 }
 0x106   :  { %3249 = shalt.err (!%p3246_p2)
}
 0x107   :  { %s3250_s24 = scalar_lea.vmem %s171_s18, 16  ;;  %s3254_s6 = scalar_lea.vmem %s171_s18, 32 }
 0x108   :  { %p3251_p3 = scmp.ne.s32.totalorder %s171_s18, %s3250_s24  ;;  %p3255_p4 = scmp.lt.s32.totalorder %s171_s18, %s171_s18 }
 0x109   :  { %p3256_p5 = scmp.lt.s32.totalorder %s3254_s6, %s3250_s24 }
 0x10b   :  { %p3257_p6 = por %p3256_p5, %p3255_p4 }
 0x10d   :  { %p3258_p7 = pnand %p3257_p6, %p3251_p3 }
 0x10f   :  { %3261 = shalt.err (!%p3258_p7)
}
 0x110   :  { %173 = dma.hbm_to_vmem [thread:$0]  %s4002_s12, 16, %s171_s18, [#allocation21]  }
 0x111   :  { %s3369_s30 = smov [#allocation25]   ;;  %s3370_s11 = smov [#allocation28]  }
 0x112   :  { %s192_s19 = sshll.u32 %s3369_s30, 4  ;;  %s214_s23 = sshll.u32 %s3370_s11, 4  ;;  %s193_s19 = int_to_ptr.vmem [resolvable:$true] %s192_s19  ;;  %s215_s23 = int_to_ptr.vmem [resolvable:$true] %s214_s23 }
 0x113   :  { %s3262_s20 = scalar_lea.hbm %s4004_s14, 16 }
 0x114   :  { %p3263_p8 = scmp.ne.s32.totalorder %s4004_s14, %s3262_s20  ;;  %p3266_p9 = scmp.lt.u32.totalorder %s3262_s20, %s4004_s14 }
 0x116   :  { %p3268_p10 = pnand %p3266_p9, %p3263_p8 }
 0x118   :  { %3271 = shalt.err (!%p3268_p10)
}
 0x119   :  { %s3272_s12 = scalar_lea.vmem %s193_s19, 16  ;;  %s3276_s18 = scalar_lea.vmem %s193_s19, 32 }
 0x11a   :  { %p3273_p11 = scmp.ne.s32.totalorder %s193_s19, %s3272_s12  ;;  %p3277_p12 = scmp.lt.s32.totalorder %s193_s19, %s193_s19 }
 0x11b   :  { %p3278_p13 = scmp.lt.s32.totalorder %s3276_s18, %s3272_s12 }
 0x11d   :  { %p3279_p0 = por %p3278_p13, %p3277_p12 }
 0x11f   :  { %p3280_p1 = pnand %p3279_p0, %p3273_p11 }
 0x121   :  { %3283 = shalt.err (!%p3280_p1)
}
 0x122   :  { %195 = dma.hbm_to_vmem [thread:$0]  %s4004_s14, 16, %s193_s19, [#allocation24]  }
 0x123   :  { %s3284_s9 = scalar_lea.hbm %s4006_s16, 16 }
 0x124   :  { %p3285_p2 = scmp.ne.s32.totalorder %s4006_s16, %s3284_s9  ;;  %p3288_p3 = scmp.lt.u32.totalorder %s3284_s9, %s4006_s16 }
 0x126   :  { %p3290_p4 = pnand %p3288_p3, %p3285_p2 }
 0x128   :  { %3293 = shalt.err (!%p3290_p4)
}
 0x129   :  { %s3294_s17 = scalar_lea.vmem %s215_s23, 16  ;;  %s3298_s24 = scalar_lea.vmem %s215_s23, 32 }
 0x12a   :  { %p3295_p5 = scmp.ne.s32.totalorder %s215_s23, %s3294_s17  ;;  %p3299_p6 = scmp.lt.s32.totalorder %s215_s23, %s215_s23 }
 0x12b   :  { %p3300_p7 = scmp.lt.s32.totalorder %s3298_s24, %s3294_s17 }
 0x12d   :  { %p3301_p8 = por %p3300_p7, %p3299_p6 }
 0x12f   :  { %p3302_p9 = pnand %p3301_p8, %p3295_p5 }
 0x131   :  { %3305 = shalt.err (!%p3302_p9)
}
 0x132   :  { %217 = dma.hbm_to_vmem [thread:$0]  %s4006_s16, 16, %s215_s23, [#allocation27]  }
 0x133   :  { %3328 = dma.done.wait [#allocation3], 256  }
 0x134   :  { %3329 = vsyncadd [#allocation3], 4294967040 }
 0x135   :  { %3330 = dma.done.wait [#allocation6], 48  }
 0x136   :  { %3331 = vsyncadd [#allocation6], 4294967248 }
 0x137   :  { %3332 = dma.done.wait [#allocation9], 3088  }
 0x138   :  { %3333 = vsyncadd [#allocation9], 4294964208 }
 0x139   :  { %3334 = dma.done.wait [#allocation12], 3088  }
 0x13a   :  { %3335 = vsyncadd [#allocation12], 4294964208 }
 0x13b   :  { %3336 = dma.done.wait [#allocation15], 3088  }
 0x13c   :  { %3337 = vsyncadd [#allocation15], 4294964208 }
 0x13d   :  { %3338 = dma.done.wait [#allocation18], 3088  }
 0x13e   :  { %3339 = vsyncadd [#allocation18], 4294964208 }
 0x13f   :  { %3340 = dma.done.wait [#allocation21], 3088  }
 0x140   :  { %3341 = vsyncadd [#allocation21], 4294964208 }
 0x141   :  { %3342 = dma.done.wait [#allocation24], 3088  }
 0x142   :  { %3343 = vsyncadd [#allocation24], 4294964208 }
 0x143   :  { %3344 = dma.done.wait [#allocation27], 1040  }
 0x144   :  { %3345 = vsyncadd [#allocation27], 4294966256  ;;  %v3371_v0 = vmov 0.0   ;;  %v270_v1 = vld [vmem:[#allocation2] sm:$0xff]  ;;  %vm276_vm0 = vcmask 31744   ;;  %v271_v2 = vld [vmem:[#allocation2 + $0x8] sm:$0xff] }
 0x145   :  { %2535 = vmatprep.subr.bf16.mxu0 %v3371_v0  ;;  %vm272_vm1 = vcmp.ne.f32.partialorder %v270_v1, %v270_v1  ;;  %vm273_vm2 = vcmp.ne.f32.partialorder %v271_v2, %v271_v2  ;;  %v292_v7 = vld [vmem:[#allocation5] sm:$0x3]  ;;  %vm303_vm3 = vcmask 1041408   ;;  %vm3372_vm4 = vmmov 0   ;;  %v2708_v14 = vld [vmem:[#allocation8 + $0x4] ss:$12 sps:$4 sm:$0xff]  }
 0x146   :  { %v274_v3 = vsel %vm272_vm1, 1.0, %v3371_v0  ;;  %v275_v4 = vsel %vm273_vm2, 1.0, %v3371_v0  ;;  %v305_v8 = vsel %vm303_vm3, %v292_v7, 0  ;;  %2537 = vmatprep.mubr.msk.bf16.mxu0 %vm3372_vm4, %v3371_v0  ;;  %v2710_v15 = vld [vmem:[#allocation8] ss:$12 sps:$4 sm:$0xff]   ;;  %560 = vmatprep.subr.bf16.mxu1 %v2708_v14  ;;  %v3373_v33 = vmov 0  }
 0x147   :  { %v277_v5 = vsel %vm276_vm0, %v274_v3, -inf  ;;  %v280_v6 = vsel %vm276_vm0, %v275_v4, -inf  ;;  %2536 = vmatpush3.bf16.msra.mxu0 %v305_v8  ;;  %v2711_v16 = vld [vmem:[#allocation8 + $0x8] ss:$12 sps:$4 sm:$0xff]   ;;  %561 = vmatpush1.bf16.msra.mxu1 %v2710_v15  ;;  %v2714_v18 = vld [vmem:[#allocation8 + $0x18] ss:$12 sps:$4 sm:$0xff]  }
 0x148   :  { %278 = vmax.xlane.f32.xlu0 %v277_v5  ;;  %2541 = vmatprep.subr.bf16.mxu0 %v3371_v0  ;;  %v2712_v17 = vld [vmem:[#allocation8 + $0x1c] ss:$12 sps:$4 sm:$0xff]   ;;  %v2715_v19 = vld [vmem:[#allocation8 + $0x20] ss:$12 sps:$4 sm:$0xff]   ;;  %v2719_v22 = vld [vmem:[#allocation8 + $0x38] ss:$12 sps:$4 sm:$0xff]  }
 0x149   :  { %562 = vmatprep.subr.bf16.mxu1 %v2712_v17  ;;  %v2716_v20 = vld [vmem:[#allocation8 + $0x34] ss:$12 sps:$4 sm:$0xff]   ;;  %v2718_v21 = vld [vmem:[#allocation8 + $0x30] ss:$12 sps:$4 sm:$0xff]   ;;  %v2720_v23 = vld [vmem:[#allocation8 + $0x4c] ss:$12 sps:$4 sm:$0xff]   ;;  %592 = vmatprep.mubr.bf16.mxu1 %v3373_v33 }
 0x14a   :  { %v2722_v24 = vld [vmem:[#allocation8 + $0x48] ss:$12 sps:$4 sm:$0xff]   ;;  %v2723_v25 = vld [vmem:[#allocation8 + $0x50] ss:$12 sps:$4 sm:$0xff]   ;;  %v2726_v27 = vld [vmem:[#allocation8 + $0x60] ss:$12 sps:$4 sm:$0xff]  }
 0x14b   :  { %563 = vmatpush1.bf16.msra.mxu1 %v2714_v18  ;;  %v2724_v26 = vld [vmem:[#allocation8 + $0x64] ss:$12 sps:$4 sm:$0xff]   ;;  %v2727_v28 = vld [vmem:[#allocation8 + $0x68] ss:$12 sps:$4 sm:$0xff]   ;;  %v2731_v31 = vld [vmem:[#allocation8 + $0x80] ss:$12 sps:$4 sm:$0xff]  }
 0x14c   :  { %281 = vmax.xlane.f32.xlu0 %v280_v6  ;;  %564 = vmatprep.subr.bf16.mxu1 %v2716_v20  ;;  %v2728_v29 = vld [vmem:[#allocation8 + $0x7c] ss:$12 sps:$4 sm:$0xff]   ;;  %v2730_v30 = vld [vmem:[#allocation8 + $0x78] ss:$12 sps:$4 sm:$0xff]   ;;  %v2732_v32 = vld [vmem:[#allocation8 + $0x94] ss:$12 sps:$4 sm:$0xff]  }
 0x14d   :  { %v2734_v34 = vld [vmem:[#allocation8 + $0x90] ss:$12 sps:$4 sm:$0xff]   ;;  %v2735_v35 = vld [vmem:[#allocation8 + $0x98] ss:$12 sps:$4 sm:$0xff]   ;;  %v2738_v37 = vld [vmem:[#allocation8 + $0xa8] ss:$12 sps:$4 sm:$0xff]  }
 0x14e   :  { %v2736_v36 = vld [vmem:[#allocation8 + $0xac] ss:$12 sps:$4 sm:$0xff]   ;;  %v2739_v38 = vld [vmem:[#allocation8 + $0xb0] ss:$12 sps:$4 sm:$0xff]   ;;  %s3374_s16 = smov [#allocation29]  }
 0x14f   :  { %565 = vmatpush1.bf16.msra.mxu1 %v2718_v21  ;;  %v2300_v39 = vld [vmem:[#allocation7] ss:$0 sm:$0xff]  ;;  %v2742_v4 = vld [vmem:[#allocation11 + $0x4] ss:$12 sps:$4 sm:$0xff]   ;;  %v2740_v5 = vld [vmem:[#allocation11] ss:$12 sps:$4 sm:$0xff]  }
 0x150   :  { %566 = vmatprep.subr.bf16.mxu1 %v2720_v23  ;;  %v2743_v6 = vld [vmem:[#allocation11 + $0x8] ss:$12 sps:$4 sm:$0xff]   ;;  %v2744_v8 = vld [vmem:[#allocation11 + $0x18] ss:$12 sps:$4 sm:$0xff]   ;;  %v2755_v15 = vld [vmem:[#allocation11 + $0x50] ss:$12 sps:$4 sm:$0xff]  }
 0x151   :  { %v2746_v7 = vld [vmem:[#allocation11 + $0x1c] ss:$12 sps:$4 sm:$0xff]   ;;  %v2758_v17 = vld [vmem:[#allocation11 + $0x64] ss:$12 sps:$4 sm:$0xff]   ;;  %v2763_v21 = vld [vmem:[#allocation11 + $0x80] ss:$12 sps:$4 sm:$0xff]  }
 0x152   :  { %v2752_v14 = vld [vmem:[#allocation11 + $0x48] ss:$12 sps:$4 sm:$0xff]   ;;  %v2760_v20 = vld [vmem:[#allocation11 + $0x78] ss:$12 sps:$4 sm:$0xff]   ;;  %v2764_v23 = vld [vmem:[#allocation11 + $0x90] ss:$12 sps:$4 sm:$0xff]  }
 0x153   :  { %567 = vmatpush1.bf16.msra.mxu1 %v2722_v24  ;;  %v2759_v18 = vld [vmem:[#allocation11 + $0x68] ss:$12 sps:$4 sm:$0xff]   ;;  %v2767_v24 = vld [vmem:[#allocation11 + $0x98] ss:$12 sps:$4 sm:$0xff]   ;;  %s2280_s10 = sshll.u32 %s3374_s16, 4  ;;  %s2281_s10 = int_to_ptr.vmem [resolvable:$true] %s2280_s10 }
 0x154   :  { %568 = vmatprep.subr.bf16.mxu1 %v2724_v26  ;;  %v2768_v26 = vld [vmem:[#allocation11 + $0xa8] ss:$12 sps:$4 sm:$0xff]   ;;  %s3306_s26 = scalar_lea.vmem %s2281_s10, 128  ;;  %p3311_p11 = scmp.lt.s32.totalorder %s2281_s10, %s2281_s10 }
 0x155   :  { %p3307_p10 = scmp.ne.s32.totalorder %s2281_s10, %s3306_s26  ;;  %p3312_p12 = scmp.lt.s32.totalorder %s3306_s26, %s3306_s26 }
 0x157   :  { %569 = vmatpush1.bf16.msra.mxu1 %v2726_v27  ;;  %v2771_v27 = vld [vmem:[#allocation11 + $0xb0] ss:$12 sps:$4 sm:$0xff]   ;;  %p3313_p13 = por %p3312_p12, %p3311_p11 }
 0x158   :  { %570 = vmatprep.subr.bf16.mxu1 %v2728_v29 }
 0x159   :  { %p3314_p0 = pnand %p3313_p13, %p3307_p10 }
 0x15b   :  { %571 = vmatpush1.bf16.msra.mxu1 %v2730_v30 }
 0x15c   :  { %572 = vmatprep.subr.bf16.mxu1 %v2732_v32 }
 0x15f   :  { %573 = vmatpush1.bf16.msra.mxu1 %v2734_v34 }
 0x160   :  { %574 = vmatprep.subr.bf16.mxu1 %v2736_v36 }
 0x163   :  { %575 = vmatpush1.bf16.msra.mxu1 %v2738_v37 }
 0x164   :  { %858 = vmatprep.subr.bf16.mxu1 %v2742_v4 }
 0x1d5   :  { %v3726_v9 = vpop.xlane.xlu0 %278 }
 0x1d6   :  { %vm283_vm5 = vcmp.gt.f32.partialorder %v3726_v9, 0.0  ;;  %v2747_v9 = vld [vmem:[#allocation11 + $0x20] ss:$12 sps:$4 sm:$0xff]  }
 0x1d7   :  { %v289_v11 = vsel %vm283_vm5, 0.0, %v270_v1 }
 0x1d9   :  { %v3729_v10 = vpop.xlane.xlu0 %281 }
 0x1da   :  { %vm284_vm6 = vcmp.gt.f32.partialorder %v3729_v10, 0.0  ;;  %v2750_v10 = vld [vmem:[#allocation11 + $0x34] ss:$12 sps:$4 sm:$0xff]  }
 0x1db   :  { %v290_v12 = vsel %vm284_vm6, 0.0, %v271_v2 }
 0x1dc   :  { %v291_v13 = vpack.c.bf16 %v290_v12, %v289_v11  ;;  %v2748_v11 = vld [vmem:[#allocation11 + $0x30] ss:$12 sps:$4 sm:$0xff]   ;;  %v2751_v12 = vld [vmem:[#allocation11 + $0x38] ss:$12 sps:$4 sm:$0xff]  }
 0x1de   :  { %2538 = vmatmul.mubr.msk.bf16.vlgmr.msra.gmra.mrb[0].mxu0 %vm276_vm0, %v291_v13  ;;  %v2754_v13 = vld [vmem:[#allocation11 + $0x4c] ss:$12 sps:$4 sm:$0xff]  }
 0x1df   :  { %2557 = vmatprep.mubr.msk.bf16.mxu0 %vm3372_vm4, %v3371_v0  ;;  %2542 = vmatpush3.bf16.msra.mxu0 %v2711_v16  ;;  %v2756_v16 = vld [vmem:[#allocation11 + $0x60] ss:$12 sps:$4 sm:$0xff]  }
 0x1e0   :  { %2543 = vmatprep.subr.bf16.mxu0 %v3371_v0 }
 0x1e3   :  { %2544 = vmatpush3.bf16.msra.mxu0 %v2715_v19  ;;  %v2762_v19 = vld [vmem:[#allocation11 + $0x7c] ss:$12 sps:$4 sm:$0xff]  }
 0x1e4   :  { %2545 = vmatprep.subr.bf16.mxu0 %v3371_v0 }
 0x1e7   :  { %2546 = vmatpush3.bf16.msra.mxu0 %v2719_v22  ;;  %v2766_v22 = vld [vmem:[#allocation11 + $0x94] ss:$12 sps:$4 sm:$0xff]  }
 0x1e8   :  { %2547 = vmatprep.subr.bf16.mxu0 %v3371_v0 }
 0x1eb   :  { %2548 = vmatpush3.bf16.msra.mxu0 %v2723_v25  ;;  %v2770_v25 = vld [vmem:[#allocation11 + $0xac] ss:$12 sps:$4 sm:$0xff]  }
 0x1ec   :  { %2549 = vmatprep.subr.bf16.mxu0 %v3371_v0 }
 0x1ef   :  { %2550 = vmatpush3.bf16.msra.mxu0 %v2727_v28  ;;  %v350_v28 = vlaneseq }
 0x1f0   :  { %2551 = vmatprep.subr.bf16.mxu0 %v3371_v0 }
 0x1f1   :  { %v3777_v29 = vshrl.u32 %v350_v28, 7  ;;  %v2786_v28 = vld [vmem:[#allocation14 + $0x4c] ss:$12 sps:$4 sm:$0xff]  }
 0x1f3   :  { %2552 = vmatpush3.bf16.msra.mxu0 %v2731_v31  ;;  %v352_v30 = vadd.s32 8, %v3777_v29  ;;  %v3781_v31 = vand.u32 7, %v3777_v29  ;;  %vm646_vm8 = vcmp.lt.s32.totalorder %v3777_v29, 1  ;;  %vm651_vm9 = vcmp.lt.s32.totalorder %v3777_v29, 7 }
 0x1f4   :  { %2553 = vmatprep.subr.bf16.mxu0 %v3371_v0  ;;  %vm1238_vm14 = vcmp.lt.s32.totalorder %v3777_v29, 2  ;;  %vm1243_vm15 = vcmp.lt.s32.totalorder %v3777_v29, 6  ;;  %vm1943_vm3 = vcmp.lt.s32.totalorder %v3777_v29, 4 }
 0x1f5   :  { %v3783_v32 = vand.u32 7, %v352_v30  ;;  %vm377_vm7 = vcmp.ge.s32.totalorder %v3781_v31, 1  ;;  %vm379_vm11 = vcmp.lt.s32.totalorder %v3781_v31, 7  ;;  %v2784_v30 = vld [vmem:[#allocation14 + $0x48] ss:$12 sps:$4 sm:$0xff]   ;;  %vm969_vm13 = vcmp.ge.s32.totalorder %v3781_v31, 2 }
 0x1f6   :  { %vm971_vm1 = vcmp.lt.s32.totalorder %v3781_v31, 6 }
 0x1f7   :  { %2554 = vmatpush3.bf16.msra.mxu0 %v2735_v35  ;;  %vm378_vm10 = vcmp.ge.s32.totalorder %v3783_v32, 1  ;;  %vm380_vm12 = vcmp.lt.s32.totalorder %v3783_v32, 7  ;;  %vm970_vm0 = vcmp.ge.s32.totalorder %v3783_v32, 2  ;;  %vm972_vm2 = vcmp.lt.s32.totalorder %v3783_v32, 6 }
 0x1f8   :  { %2555 = vmatprep.subr.bf16.mxu0 %v3371_v0 }
 0x1fb   :  { %2556 = vmatpush3.bf16.msra.mxu0 %v2739_v38 }
 0x1fc   :  { %2561 = vmatprep.subr.bf16.mxu0 %v3371_v0 }
 0x2b1   :  { %v341_v40 = vpop.f32.mrb[0].mxu0 }
 0x2b2   :  { %v342_v41 = vadd.f32 %v2300_v39, %v341_v40  ;;  %v2539_v42 = vpop.f32.mrb[1].mxu0 }
 0x2b3   :  { %v344_v43 = vpop.f32.mrb[2].mxu0 }
 0x2b4   :  { %v3750_v44 = vsel %vm283_vm5, 0.0, %v342_v41  ;;  %v345_v45 = vadd.f32 %v2300_v39, %v344_v43  ;;  %v2540_v46 = vpop.f32.mrb[3].mxu0  ;;  %vm1675_vm5 = vcmp.ge.s32.totalorder %v3783_v32, 4 }
 0x2b5   :  { %v381_v47 = vmul.f32 %v3750_v44, %v3750_v44 }
 0x2b6   :  { %v3756_v48 = vsel %vm284_vm6, 0.0, %v345_v45  ;;  %vm1676_vm6 = vcmp.lt.s32.totalorder %v3781_v31, 4 }
 0x2b7   :  { %v383_v49 = vmul.f32 %v381_v47, %v3750_v44  ;;  %v382_v50 = vmul.f32 %v3756_v48, %v3756_v48 }
 0x2b9   :  { %v385_v51 = vmul.f32 0.044715, %v383_v49  ;;  %v384_v52 = vmul.f32 %v382_v50, %v3756_v48 }
 0x2bb   :  { %v387_v53 = vadd.f32 %v385_v51, %v3750_v44  ;;  %v386_v54 = vmul.f32 0.044715, %v384_v52 }
 0x2bd   :  { %v389_v55 = vmul.f32 0.7978846, %v387_v53  ;;  %v388_v56 = vadd.f32 %v386_v54, %v3756_v48 }
 0x2bf   :  { %2908 = vtanh.f32 %v389_v55  ;;  %v390_v57 = vmul.f32 0.7978846, %v388_v56 }
 0x2c1   :  { %2910 = vtanh.f32 %v390_v57 }
 0x2c9   :  { %v2909_v58 = vpop.eup %2908 }
 0x2ca   :  { %v393_v59 = vadd.f32 1.0, %v2909_v58  ;;  %v2326_v58 = vld [vmem:[#allocation10] ss:$0 sm:$0xff] }
 0x2cb   :  { %v2911_v60 = vpop.eup %2910 }
 0x2cc   :  { %v394_v61 = vadd.f32 1.0, %v2911_v60  ;;  %v395_v62 = vmul.f32 0.5, %v393_v59 }
 0x2ce   :  { %v396_v63 = vmul.f32 0.5, %v394_v61  ;;  %v397_v1 = vmul.f32 %v395_v62, %v3750_v44 }
 0x2d0   :  { %v398_v2 = vmul.f32 %v396_v63, %v3756_v48 }
 0x2d2   :  { %v399_v3 = vpack.c.bf16 %v398_v2, %v397_v1 }
 0x2d4   :  { %593 = vmatmul.mubr.bf16.vlgmr.msra.gmra.mrb[0].mxu1 %v399_v3  ;;  %2558 = vmatmul.mubr.bf16.vlgmr.msra.gmra.mrb[4].mxu0 %v399_v3 }
 0x2d5   :  { %890 = vmatprep.mubr.bf16.mxu1 %v3373_v33  ;;  %2577 = vmatprep.mubr.msk.bf16.mxu0 %vm3372_vm4, %v3371_v0 }
 0x2d6   :  { %859 = vmatpush1.bf16.msra.mxu1 %v2740_v5  ;;  %2562 = vmatpush3.bf16.msra.mxu0 %v2743_v6 }
 0x2d7   :  { %2563 = vmatprep.subr.bf16.mxu0 %v3371_v0  ;;  %860 = vmatprep.subr.bf16.mxu1 %v2746_v7 }
 0x2da   :  { %861 = vmatpush1.bf16.msra.mxu1 %v2744_v8  ;;  %2564 = vmatpush3.bf16.msra.mxu0 %v2747_v9 }
 0x2db   :  { %2565 = vmatprep.subr.bf16.mxu0 %v3371_v0  ;;  %862 = vmatprep.subr.bf16.mxu1 %v2750_v10 }
 0x2de   :  { %863 = vmatpush1.bf16.msra.mxu1 %v2748_v11  ;;  %2566 = vmatpush3.bf16.msra.mxu0 %v2751_v12 }
 0x2df   :  { %2567 = vmatprep.subr.bf16.mxu0 %v3371_v0  ;;  %864 = vmatprep.subr.bf16.mxu1 %v2754_v13 }
 0x2e2   :  { %865 = vmatpush1.bf16.msra.mxu1 %v2752_v14  ;;  %2568 = vmatpush3.bf16.msra.mxu0 %v2755_v15 }
 0x2e3   :  { %2569 = vmatprep.subr.bf16.mxu0 %v3371_v0  ;;  %866 = vmatprep.subr.bf16.mxu1 %v2758_v17 }
 0x2e6   :  { %867 = vmatpush1.bf16.msra.mxu1 %v2756_v16  ;;  %2570 = vmatpush3.bf16.msra.mxu0 %v2759_v18 }
 0x2e7   :  { %868 = vmatprep.subr.bf16.mxu1 %v2762_v19  ;;  %2571 = vmatprep.subr.bf16.mxu0 %v3371_v0  ;;  %v2774_v19 = vld [vmem:[#allocation14 + $0x4] ss:$12 sps:$4 sm:$0xff]  }
 0x2ea   :  { %869 = vmatpush1.bf16.msra.mxu1 %v2760_v20  ;;  %2572 = vmatpush3.bf16.msra.mxu0 %v2763_v21  ;;  %v2772_v20 = vld [vmem:[#allocation14] ss:$12 sps:$4 sm:$0xff]   ;;  %v2775_v21 = vld [vmem:[#allocation14 + $0x8] ss:$12 sps:$4 sm:$0xff]  }
 0x2eb   :  { %870 = vmatprep.subr.bf16.mxu1 %v2766_v22  ;;  %2573 = vmatprep.subr.bf16.mxu0 %v3371_v0  ;;  %v2778_v22 = vld [vmem:[#allocation14 + $0x1c] ss:$12 sps:$4 sm:$0xff]  }
 0x2ee   :  { %871 = vmatpush1.bf16.msra.mxu1 %v2764_v23  ;;  %2574 = vmatpush3.bf16.msra.mxu0 %v2767_v24  ;;  %v2776_v23 = vld [vmem:[#allocation14 + $0x18] ss:$12 sps:$4 sm:$0xff]   ;;  %v2779_v24 = vld [vmem:[#allocation14 + $0x20] ss:$12 sps:$4 sm:$0xff]  }
 0x2ef   :  { %872 = vmatprep.subr.bf16.mxu1 %v2770_v25  ;;  %2575 = vmatprep.subr.bf16.mxu0 %v3371_v0  ;;  %v2782_v25 = vld [vmem:[#allocation14 + $0x34] ss:$12 sps:$4 sm:$0xff]  }
 0x2f2   :  { %873 = vmatpush1.bf16.msra.mxu1 %v2768_v26  ;;  %2576 = vmatpush3.bf16.msra.mxu0 %v2771_v27  ;;  %v2780_v26 = vld [vmem:[#allocation14 + $0x30] ss:$12 sps:$4 sm:$0xff]   ;;  %v2783_v27 = vld [vmem:[#allocation14 + $0x38] ss:$12 sps:$4 sm:$0xff]  }
 0x2f3   :  { %2581 = vmatprep.subr.bf16.mxu0 %v3371_v0  ;;  %1152 = vmatprep.subr.bf16.mxu1 %v2774_v19 }
 0x3a7   :  { %v594_v34 = vpop.f32.mrb[0].mxu1  ;;  %v637_v35 = vpop.f32.mrb[4].mxu0 }
 0x3a8   :  { %v596_v36 = vpop.f32.mrb[1].mxu1  ;;  %v2559_v37 = vpop.f32.mrb[5].mxu0  ;;  %v644_v40 = vrot.slane %v594_v34, 7  ;;  %v649_v41 = vrot.slane %v637_v35, 1  ;;  %v2787_v34 = vld [vmem:[#allocation14 + $0x50] ss:$12 sps:$4 sm:$0xff]  }
 0x3a9   :  { %v598_v38 = vpop.f32.mrb[2].mxu1  ;;  %v640_v39 = vpop.f32.mrb[6].mxu0  ;;  %v2790_v35 = vld [vmem:[#allocation14 + $0x64] ss:$12 sps:$4 sm:$0xff]   ;;  %v2791_v37 = vld [vmem:[#allocation14 + $0x68] ss:$12 sps:$4 sm:$0xff]  }
 0x3aa   :  { %v645_v42 = vrot.slane %v598_v38, 7  ;;  %v650_v43 = vrot.slane %v640_v39, 1  ;;  %v600_v45 = vpop.f32.mrb[3].mxu1  ;;  %v2560_v46 = vpop.f32.mrb[7].mxu0  ;;  %v2794_v38 = vld [vmem:[#allocation14 + $0x7c] ss:$12 sps:$4 sm:$0xff]  }
 0x3ab   :  { %v2792_v39 = vld [vmem:[#allocation14 + $0x78] ss:$12 sps:$4 sm:$0xff]   ;;  %v2800_v46 = vld [vmem:[#allocation14 + $0xa8] ss:$12 sps:$4 sm:$0xff]  }
 0x3ac   :  { %v648_v47 = vsel %vm646_vm8, %v645_v42, %v644_v40  ;;  %v652_v49 = vsel %vm651_vm9, %v649_v41, %v650_v43  ;;  %v647_v50 = vsel %vm646_vm8, %v644_v40, %v645_v42  ;;  %v653_v51 = vsel %vm651_vm9, %v650_v43, %v649_v41  ;;  %v2795_v40 = vld [vmem:[#allocation14 + $0x80] ss:$12 sps:$4 sm:$0xff]   ;;  %v2796_v42 = vld [vmem:[#allocation14 + $0x90] ss:$12 sps:$4 sm:$0xff]   ;;  %v2799_v43 = vld [vmem:[#allocation14 + $0x98] ss:$12 sps:$4 sm:$0xff]  }
 0x3ad   :  { %v658_v52 = vsel %vm377_vm7, %v648_v47, 0.0  ;;  %v659_v53 = vsel %vm378_vm10, %v647_v50, 0.0  ;;  %v666_v56 = vsel %vm379_vm11, %v652_v49, 0.0  ;;  %v667_v57 = vsel %vm380_vm12, %v653_v51, 0.0  ;;  %v2798_v41 = vld [vmem:[#allocation14 + $0x94] ss:$12 sps:$4 sm:$0xff]  }
 0x3ae   :  { %v660_v54 = vadd.f32 %v658_v52, %v596_v36  ;;  %v661_v55 = vadd.f32 %v659_v53, %v600_v45  ;;  %v2788_v36 = vld [vmem:[#allocation14 + $0x60] ss:$12 sps:$4 sm:$0xff]   ;;  %v2803_v47 = vld [vmem:[#allocation14 + $0xb0] ss:$12 sps:$4 sm:$0xff]  }
 0x3af   :  { %v2802_v45 = vld [vmem:[#allocation14 + $0xac] ss:$12 sps:$4 sm:$0xff]  }
 0x3b0   :  { %v668_v59 = vadd.f32 %v666_v56, %v660_v54  ;;  %v669_v60 = vadd.f32 %v667_v57, %v661_v55 }
 0x3b2   :  { %v677_v61 = vadd.f32 %v2326_v58, %v668_v59  ;;  %v678_v62 = vadd.f32 %v2326_v58, %v669_v60 }
 0x3b4   :  { %v679_v63 = vmul.f32 %v677_v61, %v677_v61  ;;  %v680_v1 = vmul.f32 %v678_v62, %v678_v62 }
 0x3b6   :  { %v681_v2 = vmul.f32 %v679_v63, %v677_v61  ;;  %v682_v3 = vmul.f32 %v680_v1, %v678_v62 }
 0x3b8   :  { %v683_v4 = vmul.f32 0.044715, %v681_v2  ;;  %v684_v5 = vmul.f32 0.044715, %v682_v3 }
 0x3ba   :  { %v685_v6 = vadd.f32 %v683_v4, %v677_v61  ;;  %v686_v7 = vadd.f32 %v684_v5, %v678_v62 }
 0x3bc   :  { %v687_v8 = vmul.f32 0.7978846, %v685_v6  ;;  %v688_v9 = vmul.f32 0.7978846, %v686_v7 }
 0x3be   :  { %2912 = vtanh.f32 %v688_v9 }
 0x3bf   :  { %2914 = vtanh.f32 %v687_v8  ;;  %v2351_v8 = vld [vmem:[#allocation13] ss:$0 sm:$0xff] }
 0x3c8   :  { %v2913_v10 = vpop.eup %2912 }
 0x3c9   :  { %v2915_v11 = vpop.eup %2914  ;;  %v692_v12 = vadd.f32 1.0, %v2913_v10 }
 0x3ca   :  { %v691_v13 = vadd.f32 1.0, %v2915_v11 }
 0x3cb   :  { %v694_v14 = vmul.f32 0.5, %v692_v12 }
 0x3cc   :  { %v693_v15 = vmul.f32 0.5, %v691_v13 }
 0x3cd   :  { %v696_v16 = vmul.f32 %v694_v14, %v678_v62 }
 0x3ce   :  { %v695_v17 = vmul.f32 %v693_v15, %v677_v61 }
 0x3d0   :  { %v697_v18 = vpack.c.bf16 %v696_v16, %v695_v17 }
 0x3d2   :  { %891 = vmatmul.mubr.bf16.vlgmr.msra.gmra.mrb[4].mxu1 %v697_v18  ;;  %2578 = vmatmul.mubr.bf16.vlgmr.msra.gmra.mrb[8].mxu0 %v697_v18 }
 0x3d3   :  { %1184 = vmatprep.mubr.bf16.mxu1 %v3373_v33  ;;  %2597 = vmatprep.mubr.msk.bf16.mxu0 %vm3372_vm4, %v3371_v0 }
 0x3d4   :  { %1153 = vmatpush1.bf16.msra.mxu1 %v2772_v20  ;;  %2582 = vmatpush3.bf16.msra.mxu0 %v2775_v21 }
 0x3d5   :  { %2583 = vmatprep.subr.bf16.mxu0 %v3371_v0  ;;  %1154 = vmatprep.subr.bf16.mxu1 %v2778_v22 }
 0x3d8   :  { %1155 = vmatpush1.bf16.msra.mxu1 %v2776_v23  ;;  %2584 = vmatpush3.bf16.msra.mxu0 %v2779_v24 }
 0x3d9   :  { %1156 = vmatprep.subr.bf16.mxu1 %v2782_v25  ;;  %2585 = vmatprep.subr.bf16.mxu0 %v3371_v0 }
 0x3dc   :  { %1157 = vmatpush1.bf16.msra.mxu1 %v2780_v26  ;;  %2586 = vmatpush3.bf16.msra.mxu0 %v2783_v27 }
 0x3dd   :  { %1158 = vmatprep.subr.bf16.mxu1 %v2786_v28  ;;  %2587 = vmatprep.subr.bf16.mxu0 %v3371_v0 }
 0x3e0   :  { %1159 = vmatpush1.bf16.msra.mxu1 %v2784_v30  ;;  %2588 = vmatpush3.bf16.msra.mxu0 %v2787_v34 }
 0x3e1   :  { %1160 = vmatprep.subr.bf16.mxu1 %v2790_v35  ;;  %2589 = vmatprep.subr.bf16.mxu0 %v3371_v0 }
 0x3e4   :  { %1161 = vmatpush1.bf16.msra.mxu1 %v2788_v36  ;;  %2590 = vmatpush3.bf16.msra.mxu0 %v2791_v37  ;;  %v2806_v36 = vld [vmem:[#allocation17 + $0x4] ss:$12 sps:$4 sm:$0xff]   ;;  %v2804_v37 = vld [vmem:[#allocation17] ss:$12 sps:$4 sm:$0xff]  }
 0x3e5   :  { %1162 = vmatprep.subr.bf16.mxu1 %v2794_v38  ;;  %2591 = vmatprep.subr.bf16.mxu0 %v3371_v0  ;;  %v2807_v38 = vld [vmem:[#allocation17 + $0x8] ss:$12 sps:$4 sm:$0xff]  }
 0x3e8   :  { %1163 = vmatpush1.bf16.msra.mxu1 %v2792_v39  ;;  %2592 = vmatpush3.bf16.msra.mxu0 %v2795_v40  ;;  %v2810_v39 = vld [vmem:[#allocation17 + $0x1c] ss:$12 sps:$4 sm:$0xff]   ;;  %v2808_v40 = vld [vmem:[#allocation17 + $0x18] ss:$12 sps:$4 sm:$0xff]  }
 0x3e9   :  { %1164 = vmatprep.subr.bf16.mxu1 %v2798_v41  ;;  %2593 = vmatprep.subr.bf16.mxu0 %v3371_v0  ;;  %v2811_v41 = vld [vmem:[#allocation17 + $0x20] ss:$12 sps:$4 sm:$0xff]  }
 0x3ec   :  { %1165 = vmatpush1.bf16.msra.mxu1 %v2796_v42  ;;  %2594 = vmatpush3.bf16.msra.mxu0 %v2799_v43  ;;  %v2814_v42 = vld [vmem:[#allocation17 + $0x34] ss:$12 sps:$4 sm:$0xff]   ;;  %v2812_v43 = vld [vmem:[#allocation17 + $0x30] ss:$12 sps:$4 sm:$0xff]  }
 0x3ed   :  { %1166 = vmatprep.subr.bf16.mxu1 %v2802_v45  ;;  %2595 = vmatprep.subr.bf16.mxu0 %v3371_v0  ;;  %v2815_v45 = vld [vmem:[#allocation17 + $0x38] ss:$12 sps:$4 sm:$0xff]  }
 0x3f0   :  { %1167 = vmatpush1.bf16.msra.mxu1 %v2800_v46  ;;  %2596 = vmatpush3.bf16.msra.mxu0 %v2803_v47  ;;  %v2818_v46 = vld [vmem:[#allocation17 + $0x4c] ss:$12 sps:$4 sm:$0xff]   ;;  %v2816_v47 = vld [vmem:[#allocation17 + $0x48] ss:$12 sps:$4 sm:$0xff]  }
 0x3f1   :  { %2601 = vmatprep.subr.bf16.mxu0 %v3371_v0  ;;  %1450 = vmatprep.subr.bf16.mxu1 %v2806_v36 }
 0x4a5   :  { %v892_v49 = vpop.f32.mrb[4].mxu1  ;;  %v935_v50 = vpop.f32.mrb[8].mxu0 }
 0x4a6   :  { %v894_v51 = vpop.f32.mrb[5].mxu1  ;;  %v2579_v52 = vpop.f32.mrb[9].mxu0  ;;  %v942_v55 = vrot.slane %v892_v49, 7  ;;  %v946_v56 = vrot.slane %v935_v50, 1  ;;  %v2819_v49 = vld [vmem:[#allocation17 + $0x50] ss:$12 sps:$4 sm:$0xff]  }
 0x4a7   :  { %v896_v53 = vpop.f32.mrb[6].mxu1  ;;  %v938_v54 = vpop.f32.mrb[10].mxu0  ;;  %v2820_v50 = vld [vmem:[#allocation17 + $0x60] ss:$12 sps:$4 sm:$0xff]   ;;  %v2823_v52 = vld [vmem:[#allocation17 + $0x68] ss:$12 sps:$4 sm:$0xff]  }
 0x4a8   :  { %v943_v57 = vrot.slane %v896_v53, 7  ;;  %v947_v58 = vrot.slane %v938_v54, 1  ;;  %v898_v59 = vpop.f32.mrb[7].mxu1  ;;  %v2580_v60 = vpop.f32.mrb[11].mxu0  ;;  %v2826_v53 = vld [vmem:[#allocation17 + $0x7c] ss:$12 sps:$4 sm:$0xff]  }
 0x4a9   :  { %v2824_v54 = vld [vmem:[#allocation17 + $0x78] ss:$12 sps:$4 sm:$0xff]   ;;  %v2832_v60 = vld [vmem:[#allocation17 + $0xa8] ss:$12 sps:$4 sm:$0xff]  }
 0x4aa   :  { %v945_v61 = vsel %vm646_vm8, %v943_v57, %v942_v55  ;;  %v948_v62 = vsel %vm651_vm9, %v946_v56, %v947_v58  ;;  %v944_v63 = vsel %vm646_vm8, %v942_v55, %v943_v57  ;;  %v949_v1 = vsel %vm651_vm9, %v947_v58, %v946_v56  ;;  %v2827_v55 = vld [vmem:[#allocation17 + $0x80] ss:$12 sps:$4 sm:$0xff]   ;;  %v2828_v57 = vld [vmem:[#allocation17 + $0x90] ss:$12 sps:$4 sm:$0xff]   ;;  %v2831_v58 = vld [vmem:[#allocation17 + $0x98] ss:$12 sps:$4 sm:$0xff]  }
 0x4ab   :  { %v950_v2 = vsel %vm377_vm7, %v945_v61, 0.0  ;;  %v951_v3 = vsel %vm378_vm10, %v944_v63, 0.0  ;;  %v954_v6 = vsel %vm379_vm11, %v948_v62, 0.0  ;;  %v955_v7 = vsel %vm380_vm12, %v949_v1, 0.0  ;;  %v2830_v56 = vld [vmem:[#allocation17 + $0x94] ss:$12 sps:$4 sm:$0xff]  }
 0x4ac   :  { %v952_v4 = vadd.f32 %v950_v2, %v894_v51  ;;  %v953_v5 = vadd.f32 %v951_v3, %v898_v59  ;;  %v2822_v51 = vld [vmem:[#allocation17 + $0x64] ss:$12 sps:$4 sm:$0xff]   ;;  %v2834_v59 = vld [vmem:[#allocation17 + $0xac] ss:$12 sps:$4 sm:$0xff]   ;;  %vm1677_vm7 = vcmp.lt.s32.totalorder %v3783_v32, 4 }
 0x4ad   :  { %v2835_v61 = vld [vmem:[#allocation17 + $0xb0] ss:$12 sps:$4 sm:$0xff]  }
 0x4ae   :  { %v956_v9 = vadd.f32 %v954_v6, %v952_v4  ;;  %v957_v10 = vadd.f32 %v955_v7, %v953_v5 }
 0x4b0   :  { %v965_v11 = vadd.f32 %v2351_v8, %v956_v9  ;;  %v966_v12 = vadd.f32 %v2351_v8, %v957_v10 }
 0x4b2   :  { %v3835_v13 = vadd.f32 %v965_v11, %v3750_v44  ;;  %v3838_v14 = vadd.f32 %v966_v12, %v3756_v48 }
 0x4b4   :  { %v974_v15 = vmul.f32 %v3838_v14, %v3838_v14  ;;  %v973_v16 = vmul.f32 %v3835_v13, %v3835_v13 }
 0x4b6   :  { %v975_v17 = vmul.f32 %v973_v16, %v3835_v13  ;;  %v976_v18 = vmul.f32 %v974_v15, %v3838_v14 }
 0x4b8   :  { %v977_v19 = vmul.f32 0.044715, %v975_v17  ;;  %v978_v20 = vmul.f32 0.044715, %v976_v18 }
 0x4ba   :  { %v979_v21 = vadd.f32 %v977_v19, %v3835_v13  ;;  %v980_v44 = vadd.f32 %v978_v20, %v3838_v14 }
 0x4bc   :  { %v981_v22 = vmul.f32 0.7978846, %v979_v21  ;;  %v982_v23 = vmul.f32 0.7978846, %v980_v44 }
 0x4be   :  { %2916 = vtanh.f32 %v981_v22  ;;  %v2376_v22 = vld [vmem:[#allocation16] ss:$0 sm:$0xff] }
 0x4bf   :  { %2918 = vtanh.f32 %v982_v23 }
 0x4c8   :  { %v2917_v48 = vpop.eup %2916 }
 0x4c9   :  { %v2919_v24 = vpop.eup %2918  ;;  %v985_v25 = vadd.f32 1.0, %v2917_v48 }
 0x4ca   :  { %v986_v26 = vadd.f32 1.0, %v2919_v24 }
 0x4cb   :  { %v987_v27 = vmul.f32 0.5, %v985_v25 }
 0x4cc   :  { %v988_v28 = vmul.f32 0.5, %v986_v26 }
 0x4cd   :  { %v989_v30 = vmul.f32 %v987_v27, %v3835_v13 }
 0x4ce   :  { %v990_v34 = vmul.f32 %v988_v28, %v3838_v14 }
 0x4d0   :  { %v991_v35 = vpack.c.bf16 %v990_v34, %v989_v30 }
 0x4d2   :  { %1185 = vmatmul.mubr.bf16.vlgmr.msra.gmra.mrb[8].mxu1 %v991_v35  ;;  %2598 = vmatmul.mubr.bf16.vlgmr.msra.gmra.mrb[12].mxu0 %v991_v35 }
 0x4d3   :  { %1482 = vmatprep.mubr.bf16.mxu1 %v3373_v33  ;;  %2617 = vmatprep.mubr.msk.bf16.mxu0 %vm3372_vm4, %v3371_v0 }
 0x4d4   :  { %1451 = vmatpush1.bf16.msra.mxu1 %v2804_v37  ;;  %2602 = vmatpush3.bf16.msra.mxu0 %v2807_v38 }
 0x4d5   :  { %2603 = vmatprep.subr.bf16.mxu0 %v3371_v0  ;;  %1452 = vmatprep.subr.bf16.mxu1 %v2810_v39 }
 0x4d8   :  { %1453 = vmatpush1.bf16.msra.mxu1 %v2808_v40  ;;  %2604 = vmatpush3.bf16.msra.mxu0 %v2811_v41 }
 0x4d9   :  { %2605 = vmatprep.subr.bf16.mxu0 %v3371_v0  ;;  %1454 = vmatprep.subr.bf16.mxu1 %v2814_v42 }
 0x4dc   :  { %1455 = vmatpush1.bf16.msra.mxu1 %v2812_v43  ;;  %2606 = vmatpush3.bf16.msra.mxu0 %v2815_v45 }
 0x4dd   :  { %2607 = vmatprep.subr.bf16.mxu0 %v3371_v0  ;;  %1456 = vmatprep.subr.bf16.mxu1 %v2818_v46 }
 0x4e0   :  { %1457 = vmatpush1.bf16.msra.mxu1 %v2816_v47  ;;  %2608 = vmatpush3.bf16.msra.mxu0 %v2819_v49 }
 0x4e1   :  { %2609 = vmatprep.subr.bf16.mxu0 %v3371_v0  ;;  %1458 = vmatprep.subr.bf16.mxu1 %v2822_v51 }
 0x4e4   :  { %1459 = vmatpush1.bf16.msra.mxu1 %v2820_v50  ;;  %2610 = vmatpush3.bf16.msra.mxu0 %v2823_v52  ;;  %v2836_v50 = vld [vmem:[#allocation26] sm:$0xff]   ;;  %v2837_v52 = vld [vmem:[#allocation26 + $0x8] sm:$0xff]  }
 0x4e5   :  { %1460 = vmatprep.subr.bf16.mxu1 %v2826_v53  ;;  %2611 = vmatprep.subr.bf16.mxu0 %v3371_v0  ;;  %v2838_v53 = vld [vmem:[#allocation26 + $0x10] sm:$0xff]  }
 0x4e8   :  { %1461 = vmatpush1.bf16.msra.mxu1 %v2824_v54  ;;  %2612 = vmatpush3.bf16.msra.mxu0 %v2827_v55  ;;  %v2839_v54 = vld [vmem:[#allocation26 + $0x18] sm:$0xff]   ;;  %v2840_v55 = vld [vmem:[#allocation26 + $0x20] sm:$0xff]  }
 0x4e9   :  { %1462 = vmatprep.subr.bf16.mxu1 %v2830_v56  ;;  %2613 = vmatprep.subr.bf16.mxu0 %v3371_v0  ;;  %v2841_v56 = vld [vmem:[#allocation26 + $0x28] sm:$0xff]  }
 0x4ec   :  { %1463 = vmatpush1.bf16.msra.mxu1 %v2828_v57  ;;  %2614 = vmatpush3.bf16.msra.mxu0 %v2831_v58  ;;  %v2842_v57 = vld [vmem:[#allocation26 + $0x30] sm:$0xff]   ;;  %v2845_v58 = vld [vmem:[#allocation20 + $0x4] ss:$12 sps:$4 sm:$0xff]  }
 0x4ed   :  { %1464 = vmatprep.subr.bf16.mxu1 %v2834_v59  ;;  %2615 = vmatprep.subr.bf16.mxu0 %v3371_v0  ;;  %v2843_v59 = vld [vmem:[#allocation20] ss:$12 sps:$4 sm:$0xff]  }
 0x4f0   :  { %1465 = vmatpush1.bf16.msra.mxu1 %v2832_v60  ;;  %2616 = vmatpush3.bf16.msra.mxu0 %v2835_v61  ;;  %v2846_v60 = vld [vmem:[#allocation26 + $0x38] sm:$0xff]  }
 0x4f1   :  { %2621 = vmatprep.subr.bf16.mxu1 %v3371_v0  ;;  %1857 = vmatprep.subr.bf16.mxu0 %v2845_v58  ;;  %v2849_v61 = vld [vmem:[#allocation20 + $0x1c] ss:$12 sps:$4 sm:$0xff]  }
 0x5a5   :  { %v1186_v62 = vpop.f32.mrb[8].mxu1  ;;  %v1229_v63 = vpop.f32.mrb[12].mxu0 }
 0x5a6   :  { %v1188_v1 = vpop.f32.mrb[9].mxu1  ;;  %v2599_v2 = vpop.f32.mrb[13].mxu0  ;;  %v1236_v5 = vrot.slane %v1186_v62, 6  ;;  %v1241_v6 = vrot.slane %v1229_v63, 2  ;;  %v2847_v62 = vld [vmem:[#allocation20 + $0x18] ss:$12 sps:$4 sm:$0xff]  }
 0x5a7   :  { %v1190_v3 = vpop.f32.mrb[10].mxu1  ;;  %v1232_v4 = vpop.f32.mrb[14].mxu0  ;;  %v2851_v63 = vld [vmem:[#allocation20 + $0x30] ss:$12 sps:$4 sm:$0xff]   ;;  %v2855_v2 = vld [vmem:[#allocation20 + $0x48] ss:$12 sps:$4 sm:$0xff]  }
 0x5a8   :  { %v1237_v7 = vrot.slane %v1190_v3, 6  ;;  %v1242_v8 = vrot.slane %v1232_v4, 2  ;;  %v1192_v9 = vpop.f32.mrb[11].mxu1  ;;  %v2600_v10 = vpop.f32.mrb[15].mxu0  ;;  %v2857_v3 = vld [vmem:[#allocation20 + $0x4c] ss:$12 sps:$4 sm:$0xff]  }
 0x5a9   :  { %v2859_v4 = vld [vmem:[#allocation20 + $0x60] ss:$12 sps:$4 sm:$0xff]   ;;  %v2871_v10 = vld [vmem:[#allocation20 + $0xa8] ss:$12 sps:$4 sm:$0xff]  }
 0x5aa   :  { %v1240_v11 = vsel %vm1238_vm14, %v1237_v7, %v1236_v5  ;;  %v1244_v12 = vsel %vm1243_vm15, %v1241_v6, %v1242_v8  ;;  %v1239_v15 = vsel %vm1238_vm14, %v1236_v5, %v1237_v7  ;;  %v1245_v16 = vsel %vm1243_vm15, %v1242_v8, %v1241_v6  ;;  %v2861_v5 = vld [vmem:[#allocation20 + $0x64] ss:$12 sps:$4 sm:$0xff]   ;;  %v2865_v7 = vld [vmem:[#allocation20 + $0x7c] ss:$12 sps:$4 sm:$0xff]  }
 0x5ab   :  { %v1250_v17 = vsel %vm969_vm13, %v1240_v11, 0.0  ;;  %v1251_v18 = vsel %vm970_vm0, %v1239_v15, 0.0  ;;  %v1258_v21 = vsel %vm971_vm1, %v1244_v12, 0.0  ;;  %v1259_v44 = vsel %vm972_vm2, %v1245_v16, 0.0  ;;  %v2863_v6 = vld [vmem:[#allocation20 + $0x78] ss:$12 sps:$4 sm:$0xff]  }
 0x5ac   :  { %v1252_v19 = vadd.f32 %v1250_v17, %v1188_v1  ;;  %v1253_v20 = vadd.f32 %v1251_v18, %v1192_v9  ;;  %v2853_v1 = vld [vmem:[#allocation20 + $0x34] ss:$12 sps:$4 sm:$0xff]   ;;  %v2867_v8 = vld [vmem:[#allocation20 + $0x90] ss:$12 sps:$4 sm:$0xff]   ;;  %v2873_v11 = vld [vmem:[#allocation20 + $0xac] ss:$12 sps:$4 sm:$0xff]  }
 0x5ad   :  { %v2869_v9 = vld [vmem:[#allocation20 + $0x94] ss:$12 sps:$4 sm:$0xff]  }
 0x5ae   :  { %v1260_v23 = vadd.f32 %v1258_v21, %v1252_v19  ;;  %v1261_v48 = vadd.f32 %v1259_v44, %v1253_v20 }
 0x5b0   :  { %v1269_v24 = vadd.f32 %v2376_v22, %v1260_v23  ;;  %v1270_v25 = vadd.f32 %v2376_v22, %v1261_v48 }
 0x5b2   :  { %v1271_v26 = vmul.f32 %v1269_v24, %v1269_v24  ;;  %v1272_v27 = vmul.f32 %v1270_v25, %v1270_v25 }
 0x5b4   :  { %v1273_v28 = vmul.f32 %v1271_v26, %v1269_v24  ;;  %v1274_v30 = vmul.f32 %v1272_v27, %v1270_v25 }
 0x5b6   :  { %v1275_v34 = vmul.f32 0.044715, %v1273_v28  ;;  %v1276_v35 = vmul.f32 0.044715, %v1274_v30 }
 0x5b8   :  { %v1277_v36 = vadd.f32 %v1275_v34, %v1269_v24  ;;  %v1278_v37 = vadd.f32 %v1276_v35, %v1270_v25 }
 0x5ba   :  { %v1279_v38 = vmul.f32 0.7978846, %v1277_v36  ;;  %v1280_v39 = vmul.f32 0.7978846, %v1278_v37 }
 0x5bc   :  { %2920 = vtanh.f32 %v1280_v39 }
 0x5bd   :  { %2922 = vtanh.f32 %v1279_v38  ;;  %v2401_v38 = vld [vmem:[#allocation19] ss:$0 sm:$0xff] }
 0x5c6   :  { %v2921_v40 = vpop.eup %2920 }
 0x5c7   :  { %v2923_v41 = vpop.eup %2922  ;;  %v1284_v42 = vadd.f32 1.0, %v2921_v40 }
 0x5c8   :  { %v1283_v43 = vadd.f32 1.0, %v2923_v41 }
 0x5c9   :  { %v1286_v45 = vmul.f32 0.5, %v1284_v42 }
 0x5ca   :  { %v1285_v46 = vmul.f32 0.5, %v1283_v43 }
 0x5cb   :  { %v1288_v47 = vmul.f32 %v1286_v45, %v1270_v25 }
 0x5cc   :  { %v1287_v49 = vmul.f32 %v1285_v46, %v1269_v24  ;;  %v2850_v46 = vld [vmem:[#allocation20 + $0x8] ss:$12 sps:$4 sm:$0xff]  }
 0x5ce   :  { %v1289_v51 = vpack.c.bf16 %v1288_v47, %v1287_v49 }
 0x5d0   :  { %1483 = vmatmul.mubr.bf16.vlgmr.msra.gmra.mrb[12].mxu1 %v1289_v51  ;;  %2618 = vmatmul.mubr.bf16.vlgmr.msra.gmra.mrb[16].mxu0 %v1289_v51 }
 0x5d1   :  { %2622 = vmatpush3.bf16.msra.mxu1 %v2836_v50  ;;  %2637 = vmatprep.mubr.msk.bf16.mxu1 %vm3372_vm4, %v3371_v0 }
 0x5d2   :  { %2623 = vmatprep.subr.bf16.mxu1 %v3371_v0  ;;  %1889 = vmatprep.mubr.bf16.mxu0 %v3373_v33 }
 0x5d3   :  { %1858 = vmatpush1.bf16.msra.mxu0 %v2843_v59  ;;  %v2862_v59 = vld [vmem:[#allocation20 + $0x50] ss:$12 sps:$4 sm:$0xff]  }
 0x5d4   :  { %1859 = vmatprep.subr.bf16.mxu0 %v2849_v61  ;;  %v2870_v61 = vld [vmem:[#allocation20 + $0x80] ss:$12 sps:$4 sm:$0xff]  }
 0x5d5   :  { %2624 = vmatpush3.bf16.msra.mxu1 %v2837_v52 }
 0x5d6   :  { %2625 = vmatprep.subr.bf16.mxu1 %v3371_v0 }
 0x5d7   :  { %1860 = vmatpush1.bf16.msra.mxu0 %v2847_v62 }
 0x5d8   :  { %1861 = vmatprep.subr.bf16.mxu0 %v2853_v1 }
 0x5d9   :  { %2626 = vmatpush3.bf16.msra.mxu1 %v2838_v53  ;;  %v2854_v53 = vld [vmem:[#allocation20 + $0x20] ss:$12 sps:$4 sm:$0xff]  }
 0x5da   :  { %2627 = vmatprep.subr.bf16.mxu1 %v3371_v0 }
 0x5db   :  { %1862 = vmatpush1.bf16.msra.mxu0 %v2851_v63 }
 0x5dc   :  { %1863 = vmatprep.subr.bf16.mxu0 %v2857_v3  ;;  %v2874_v3 = vld [vmem:[#allocation20 + $0x98] ss:$12 sps:$4 sm:$0xff]  }
 0x5dd   :  { %2628 = vmatpush3.bf16.msra.mxu1 %v2839_v54 }
 0x5de   :  { %2629 = vmatprep.subr.bf16.mxu1 %v3371_v0 }
 0x5df   :  { %1864 = vmatpush1.bf16.msra.mxu0 %v2855_v2 }
 0x5e0   :  { %1865 = vmatprep.subr.bf16.mxu0 %v2861_v5 }
 0x5e1   :  { %2630 = vmatpush3.bf16.msra.mxu1 %v2840_v55 }
 0x5e2   :  { %2631 = vmatprep.subr.bf16.mxu1 %v3371_v0 }
 0x5e3   :  { %1866 = vmatpush1.bf16.msra.mxu0 %v2859_v4 }
 0x5e4   :  { %1867 = vmatprep.subr.bf16.mxu0 %v2865_v7 }
 0x5e5   :  { %2632 = vmatpush3.bf16.msra.mxu1 %v2841_v56 }
 0x5e6   :  { %2633 = vmatprep.subr.bf16.mxu1 %v3371_v0 }
 0x5e7   :  { %1868 = vmatpush1.bf16.msra.mxu0 %v2863_v6 }
 0x5e8   :  { %1869 = vmatprep.subr.bf16.mxu0 %v2869_v9 }
 0x5e9   :  { %2634 = vmatpush3.bf16.msra.mxu1 %v2842_v57 }
 0x5ea   :  { %2635 = vmatprep.subr.bf16.mxu1 %v3371_v0 }
 0x5eb   :  { %1870 = vmatpush1.bf16.msra.mxu0 %v2867_v8  ;;  %v2875_v8 = vld [vmem:[#allocation20 + $0xb0] ss:$12 sps:$4 sm:$0xff]  }
 0x5ec   :  { %1871 = vmatprep.subr.bf16.mxu0 %v2873_v11  ;;  %v2876_v11 = vld [vmem:[#allocation23] ss:$12 sps:$4 sm:$0xff]  }
 0x5ed   :  { %2636 = vmatpush3.bf16.msra.mxu1 %v2846_v60  ;;  %v2866_v60 = vld [vmem:[#allocation20 + $0x68] ss:$12 sps:$4 sm:$0xff]  }
 0x5ee   :  { %2641 = vmatprep.subr.bf16.mxu1 %v3371_v0 }
 0x5ef   :  { %1872 = vmatpush1.bf16.msra.mxu0 %v2871_v10  ;;  %v2878_v10 = vld [vmem:[#allocation23 + $0x4] ss:$12 sps:$4 sm:$0xff]  }
 0x5f0   :  { %2154 = vmatprep.subr.bf16.mxu0 %v2878_v10 }
 0x6a3   :  { %v1484_v12 = vpop.f32.mrb[12].mxu1  ;;  %v1527_v15 = vpop.f32.mrb[16].mxu0 }
 0x6a4   :  { %v1486_v16 = vpop.f32.mrb[13].mxu1  ;;  %v2619_v17 = vpop.f32.mrb[17].mxu0  ;;  %v1534_v20 = vrot.slane %v1484_v12, 6  ;;  %v1538_v21 = vrot.slane %v1527_v15, 2  ;;  %v2879_v12 = vld [vmem:[#allocation23 + $0x8] ss:$12 sps:$4 sm:$0xff]  }
 0x6a5   :  { %v1488_v18 = vpop.f32.mrb[14].mxu1  ;;  %v1530_v19 = vpop.f32.mrb[18].mxu0  ;;  %v2882_v15 = vld [vmem:[#allocation23 + $0x1c] ss:$12 sps:$4 sm:$0xff]   ;;  %v2883_v17 = vld [vmem:[#allocation23 + $0x20] ss:$12 sps:$4 sm:$0xff]  }
 0x6a6   :  { %v1535_v44 = vrot.slane %v1488_v18, 6  ;;  %v1539_v22 = vrot.slane %v1530_v19, 2  ;;  %v1490_v23 = vpop.f32.mrb[15].mxu1  ;;  %v2620_v48 = vpop.f32.mrb[19].mxu0  ;;  %v2884_v18 = vld [vmem:[#allocation23 + $0x30] ss:$12 sps:$4 sm:$0xff]  }
 0x6a7   :  { %v2887_v19 = vld [vmem:[#allocation23 + $0x38] ss:$12 sps:$4 sm:$0xff]   ;;  %v2895_v48 = vld [vmem:[#allocation23 + $0x68] ss:$12 sps:$4 sm:$0xff]  }
 0x6a8   :  { %v1537_v24 = vsel %vm1238_vm14, %v1535_v44, %v1534_v20  ;;  %v1540_v25 = vsel %vm1243_vm15, %v1538_v21, %v1539_v22  ;;  %v1536_v26 = vsel %vm1238_vm14, %v1534_v20, %v1535_v44  ;;  %v1541_v27 = vsel %vm1243_vm15, %v1539_v22, %v1538_v21  ;;  %v2890_v20 = vld [vmem:[#allocation23 + $0x4c] ss:$12 sps:$4 sm:$0xff]   ;;  %v2888_v21 = vld [vmem:[#allocation23 + $0x48] ss:$12 sps:$4 sm:$0xff]   ;;  %v2891_v44 = vld [vmem:[#allocation23 + $0x50] ss:$12 sps:$4 sm:$0xff]  }
 0x6a9   :  { %v1542_v28 = vsel %vm969_vm13, %v1537_v24, 0.0  ;;  %v1543_v30 = vsel %vm970_vm0, %v1536_v26, 0.0  ;;  %v1546_v36 = vsel %vm971_vm1, %v1540_v25, 0.0  ;;  %v1547_v37 = vsel %vm972_vm2, %v1541_v27, 0.0  ;;  %v2894_v22 = vld [vmem:[#allocation23 + $0x64] ss:$12 sps:$4 sm:$0xff]  }
 0x6aa   :  { %v1544_v34 = vadd.f32 %v1542_v28, %v1486_v16  ;;  %v1545_v35 = vadd.f32 %v1543_v30, %v1490_v23  ;;  %v2880_v16 = vld [vmem:[#allocation23 + $0x18] ss:$12 sps:$4 sm:$0xff]   ;;  %v2892_v23 = vld [vmem:[#allocation23 + $0x60] ss:$12 sps:$4 sm:$0xff]   ;;  %v2898_v24 = vld [vmem:[#allocation23 + $0x7c] ss:$12 sps:$4 sm:$0xff]  }
 0x6ab   :  { %v2896_v25 = vld [vmem:[#allocation23 + $0x78] ss:$12 sps:$4 sm:$0xff]   ;;  %v2899_v26 = vld [vmem:[#allocation23 + $0x80] ss:$12 sps:$4 sm:$0xff]   ;;  %v2900_v28 = vld [vmem:[#allocation23 + $0x90] ss:$12 sps:$4 sm:$0xff]  }
 0x6ac   :  { %v1548_v39 = vadd.f32 %v1546_v36, %v1544_v34  ;;  %v1549_v40 = vadd.f32 %v1547_v37, %v1545_v35  ;;  %v2902_v27 = vld [vmem:[#allocation23 + $0x94] ss:$12 sps:$4 sm:$0xff]   ;;  %v2903_v30 = vld [vmem:[#allocation23 + $0x98] ss:$12 sps:$4 sm:$0xff]   ;;  %v2907_v36 = vld [vmem:[#allocation23 + $0xb0] ss:$12 sps:$4 sm:$0xff]  }
 0x6ad   :  { %v2906_v34 = vld [vmem:[#allocation23 + $0xac] ss:$12 sps:$4 sm:$0xff]   ;;  %v2904_v35 = vld [vmem:[#allocation23 + $0xa8] ss:$12 sps:$4 sm:$0xff]  }
 0x6ae   :  { %v1557_v41 = vadd.f32 %v2401_v38, %v1548_v39  ;;  %v1558_v42 = vadd.f32 %v2401_v38, %v1549_v40 }
 0x6b0   :  { %v1559_v43 = vadd.f32 %v1557_v41, %v3835_v13  ;;  %v1560_v45 = vadd.f32 %v1558_v42, %v3838_v14  ;;  %v2858_v14 = vld [vmem:[#allocation20 + $0x38] ss:$12 sps:$4 sm:$0xff]  }
 0x6b2   :  { %v1679_v47 = vmul.f32 %v1560_v45, %v1560_v45  ;;  %v1561_v49 = vpack.c.bf16 %v1560_v45, %v1559_v43  ;;  %v1678_v50 = vmul.f32 %v1559_v43, %v1559_v43 }
 0x6b4   :  { %2638 = vmatmul.mubr.bf16.vlgmr.msra.gmra.mrb[16].mxu1 %v1561_v49  ;;  %v1680_v51 = vmul.f32 %v1678_v50, %v1559_v43  ;;  %v1681_v52 = vmul.f32 %v1679_v47, %v1560_v45 }
 0x6b5   :  { %2642 = vmatpush3.bf16.msra.mxu1 %v2850_v46  ;;  %2657 = vmatprep.mubr.msk.bf16.mxu1 %vm3372_vm4, %v3371_v0 }
 0x6b6   :  { %2643 = vmatprep.subr.bf16.mxu1 %v3371_v0  ;;  %v1682_v54 = vmul.f32 0.044715, %v1680_v51  ;;  %v1683_v55 = vmul.f32 0.044715, %v1681_v52 }
 0x6b8   :  { %v1684_v56 = vadd.f32 %v1682_v54, %v1559_v43  ;;  %v1685_v13 = vadd.f32 %v1683_v55, %v1560_v45 }
 0x6b9   :  { %2644 = vmatpush3.bf16.msra.mxu1 %v2854_v53 }
 0x6ba   :  { %2645 = vmatprep.subr.bf16.mxu1 %v3371_v0  ;;  %v1686_v57 = vmul.f32 0.7978846, %v1684_v56  ;;  %v1687_v58 = vmul.f32 0.7978846, %v1685_v13 }
 0x6bc   :  { %2924 = vtanh.f32 %v1686_v57 }
 0x6bd   :  { %2646 = vmatpush3.bf16.msra.mxu1 %v2858_v14  ;;  %2926 = vtanh.f32 %v1687_v58 }
 0x6be   :  { %2647 = vmatprep.subr.bf16.mxu1 %v3371_v0 }
 0x6c1   :  { %2648 = vmatpush3.bf16.msra.mxu1 %v2862_v59 }
 0x6c2   :  { %2649 = vmatprep.subr.bf16.mxu1 %v3371_v0 }
 0x6c5   :  { %2650 = vmatpush3.bf16.msra.mxu1 %v2866_v60 }
 0x6c6   :  { %v2925_v62 = vpop.eup %2924  ;;  %2651 = vmatprep.subr.bf16.mxu1 %v3371_v0 }
 0x6c7   :  { %v2927_v63 = vpop.eup %2926  ;;  %v1690_v1 = vadd.f32 1.0, %v2925_v62  ;;  %v2435_v62 = vld [vmem:[#allocation22] ss:$0 sm:$0xff] }
 0x6c8   :  { %v1691_v2 = vadd.f32 1.0, %v2927_v63 }
 0x6c9   :  { %2652 = vmatpush3.bf16.msra.mxu1 %v2870_v61  ;;  %v1692_v4 = vmul.f32 0.5, %v1690_v1 }
 0x6ca   :  { %2653 = vmatprep.subr.bf16.mxu1 %v3371_v0  ;;  %v1693_v5 = vmul.f32 0.5, %v1691_v2 }
 0x6cb   :  { %v1694_v6 = vmul.f32 %v1692_v4, %v1559_v43 }
 0x6cc   :  { %v1695_v7 = vmul.f32 %v1693_v5, %v1560_v45 }
 0x6cd   :  { %2654 = vmatpush3.bf16.msra.mxu1 %v2874_v3 }
 0x6ce   :  { %v1696_v9 = vpack.c.bf16 %v1695_v7, %v1694_v6  ;;  %2655 = vmatprep.subr.bf16.mxu1 %v3371_v0 }
 0x6d0   :  { %1890 = vmatmul.mubr.bf16.vlgmr.msra.gmra.mrb[20].mxu0 %v1696_v9 }
 0x6d1   :  { %2656 = vmatpush3.bf16.msra.mxu1 %v2875_v8  ;;  %2186 = vmatprep.mubr.bf16.mxu0 %v3373_v33  ;;  %v2886_v33 = vld [vmem:[#allocation23 + $0x34] ss:$12 sps:$4 sm:$0xff]  }
 0x6d2   :  { %2661 = vmatprep.subr.bf16.mxu1 %v3371_v0  ;;  %2155 = vmatpush1.bf16.msra.mxu0 %v2876_v11 }
 0x6d3   :  { %2156 = vmatprep.subr.bf16.mxu0 %v2882_v15 }
 0x6d4   :  { %2658 = vmatmul.mubr.bf16.vlgmr.msra.gmra.mrb[20].mxu1 %v1696_v9 }
 0x6d5   :  { %2677 = vmatprep.mubr.msk.bf16.mxu1 %vm3372_vm4, %v3371_v0  ;;  %2662 = vmatpush3.bf16.msra.mxu1 %v2879_v12  ;;  %vm1674_vm4 = vcmp.ge.s32.totalorder %v3781_v31, 4 }
 0x6d6   :  { %2663 = vmatprep.subr.bf16.mxu1 %v3371_v0  ;;  %2157 = vmatpush1.bf16.msra.mxu0 %v2880_v16 }
 0x6d7   :  { %2158 = vmatprep.subr.bf16.mxu0 %v2886_v33 }
 0x6d9   :  { %2664 = vmatpush3.bf16.msra.mxu1 %v2883_v17 }
 0x6da   :  { %2665 = vmatprep.subr.bf16.mxu1 %v3371_v0  ;;  %2159 = vmatpush1.bf16.msra.mxu0 %v2884_v18 }
 0x6db   :  { %2160 = vmatprep.subr.bf16.mxu0 %v2890_v20 }
 0x6dd   :  { %2666 = vmatpush3.bf16.msra.mxu1 %v2887_v19 }
 0x6de   :  { %2667 = vmatprep.subr.bf16.mxu1 %v3371_v0  ;;  %2161 = vmatpush1.bf16.msra.mxu0 %v2888_v21 }
 0x6df   :  { %2162 = vmatprep.subr.bf16.mxu0 %v2894_v22 }
 0x6e1   :  { %2668 = vmatpush3.bf16.msra.mxu1 %v2891_v44 }
 0x6e2   :  { %2669 = vmatprep.subr.bf16.mxu1 %v3371_v0  ;;  %2163 = vmatpush1.bf16.msra.mxu0 %v2892_v23 }
 0x6e3   :  { %2164 = vmatprep.subr.bf16.mxu0 %v2898_v24 }
 0x6e5   :  { %2670 = vmatpush3.bf16.msra.mxu1 %v2895_v48 }
 0x6e6   :  { %2671 = vmatprep.subr.bf16.mxu1 %v3371_v0  ;;  %2165 = vmatpush1.bf16.msra.mxu0 %v2896_v25 }
 0x6e7   :  { %2166 = vmatprep.subr.bf16.mxu0 %v2902_v27 }
 0x6e9   :  { %2672 = vmatpush3.bf16.msra.mxu1 %v2899_v26 }
 0x6ea   :  { %2673 = vmatprep.subr.bf16.mxu1 %v3371_v0  ;;  %2167 = vmatpush1.bf16.msra.mxu0 %v2900_v28 }
 0x6eb   :  { %2168 = vmatprep.subr.bf16.mxu0 %v2906_v34 }
 0x6ed   :  { %2674 = vmatpush3.bf16.msra.mxu1 %v2903_v30 }
 0x6ee   :  { %2675 = vmatprep.subr.bf16.mxu1 %v3371_v0  ;;  %2169 = vmatpush1.bf16.msra.mxu0 %v2904_v35 }
 0x6f1   :  { %2676 = vmatpush3.bf16.msra.mxu1 %v2907_v36 }
 0x787   :  { %v3932_v37 = vpop.f32.mrb[16].mxu1 }
 0x788   :  { %v2639_v38 = vpop.f32.mrb[17].mxu1 }
 0x789   :  { %v3934_v39 = vpop.f32.mrb[18].mxu1 }
 0x78a   :  { %v2640_v40 = vpop.f32.mrb[19].mxu1 }
 0x7a3   :  { %v1891_v41 = vpop.f32.mrb[20].mxu0 }
 0x7a4   :  { %v1893_v42 = vpop.f32.mrb[21].mxu0  ;;  %v1941_v45 = vrot.slane %v1891_v41, 4 }
 0x7a5   :  { %v1895_v43 = vpop.f32.mrb[22].mxu0 }
 0x7a6   :  { %v1942_v46 = vrot.slane %v1895_v43, 4  ;;  %v1897_v0 = vpop.f32.mrb[23].mxu0 }
 0x7a7   :  { %v1934_v47 = vpop.f32.mrb[20].mxu1 }
 0x7a8   :  { %v1945_v49 = vsel %vm1943_vm3, %v1942_v46, %v1941_v45  ;;  %v1944_v50 = vsel %vm1943_vm3, %v1941_v45, %v1942_v46  ;;  %v2659_v51 = vpop.f32.mrb[21].mxu1  ;;  %v1946_v13 = vrot.slane %v1934_v47, 4 }
 0x7a9   :  { %v1954_v52 = vsel %vm1674_vm4, %v1945_v49, 0.0  ;;  %v1955_v53 = vsel %vm1675_vm5, %v1944_v50, 0.0  ;;  %v1937_v54 = vpop.f32.mrb[22].mxu1  ;;  %v2402_v49 = vld [vmem:[#allocation28] ss:$0 sm:$0xff] }
 0x7aa   :  { %v1956_v55 = vadd.f32 %v1954_v52, %v1893_v42  ;;  %v1957_v56 = vadd.f32 %v1955_v53, %v1897_v0  ;;  %v1947_v14 = vrot.slane %v1937_v54, 4  ;;  %v2660_v57 = vpop.f32.mrb[23].mxu1  ;;  %v2460_v52 = vld [vmem:[#allocation25] ss:$0 sm:$0xff]  ;;  %v1668_v29 = vadd.f32 %v2402_v49, %v3932_v37 }
 0x7ac   :  { %v1948_v58 = vsel %vm1943_vm3, %v1946_v13, %v1947_v14  ;;  %v1949_v59 = vsel %vm1943_vm3, %v1947_v14, %v1946_v13 }
 0x7ad   :  { %v1962_v60 = vsel %vm1676_vm6, %v1948_v58, 0.0  ;;  %v1963_v61 = vsel %vm1677_vm7, %v1949_v59, 0.0 }
 0x7ae   :  { %v1964_v63 = vadd.f32 %v1962_v60, %v1956_v55  ;;  %v1965_v1 = vadd.f32 %v1963_v61, %v1957_v56  ;;  %v1671_v55 = vadd.f32 %v2402_v49, %v3934_v39 }
 0x7b0   :  { %v1973_v2 = vadd.f32 %v2435_v62, %v1964_v63  ;;  %v1974_v3 = vadd.f32 %v2435_v62, %v1965_v1 }
 0x7b2   :  { %v1975_v4 = vmul.f32 %v1973_v2, %v1973_v2  ;;  %v1976_v5 = vmul.f32 %v1974_v3, %v1974_v3 }
 0x7b4   :  { %v1977_v6 = vmul.f32 %v1975_v4, %v1973_v2  ;;  %v1978_v7 = vmul.f32 %v1976_v5, %v1974_v3 }
 0x7b6   :  { %v1979_v8 = vmul.f32 0.044715, %v1977_v6  ;;  %v1980_v9 = vmul.f32 0.044715, %v1978_v7 }
 0x7b8   :  { %v1981_v10 = vadd.f32 %v1979_v8, %v1973_v2  ;;  %v1982_v11 = vadd.f32 %v1980_v9, %v1974_v3 }
 0x7ba   :  { %v1983_v12 = vmul.f32 0.7978846, %v1981_v10  ;;  %v1984_v15 = vmul.f32 0.7978846, %v1982_v11 }
 0x7bc   :  { %2928 = vtanh.f32 %v1983_v12 }
 0x7bd   :  { %2930 = vtanh.f32 %v1984_v15 }
 0x7c6   :  { %v2929_v16 = vpop.eup %2928 }
 0x7c7   :  { %v2931_v17 = vpop.eup %2930  ;;  %v1987_v33 = vadd.f32 1.0, %v2929_v16 }
 0x7c8   :  { %v1988_v18 = vadd.f32 1.0, %v2931_v17 }
 0x7c9   :  { %v1989_v19 = vmul.f32 0.5, %v1987_v33 }
 0x7ca   :  { %v1990_v20 = vmul.f32 0.5, %v1988_v18 }
 0x7cb   :  { %v1991_v21 = vmul.f32 %v1989_v19, %v1973_v2 }
 0x7cc   :  { %v1992_v44 = vmul.f32 %v1990_v20, %v1974_v3 }
 0x7ce   :  { %v1993_v22 = vpack.c.bf16 %v1992_v44, %v1991_v21 }
 0x7d0   :  { %2187 = vmatmul.mubr.bf16.vlgmr.msra.gmra.mrb[24].mxu0 %v1993_v22  ;;  %2678 = vmatmul.mubr.bf16.vlgmr.msra.gmra.mrb[24].mxu1 %v1993_v22 }
 0x8a3   :  { %v2188_v23 = vpop.f32.mrb[24].mxu0  ;;  %v2231_v48 = vpop.f32.mrb[24].mxu1 }
 0x8a4   :  { %v2190_v24 = vpop.f32.mrb[25].mxu0  ;;  %v2679_v25 = vpop.f32.mrb[25].mxu1  ;;  %v2238_v28 = vrot.slane %v2188_v23, 4  ;;  %v2242_v30 = vrot.slane %v2231_v48, 4 }
 0x8a5   :  { %v2192_v26 = vpop.f32.mrb[26].mxu0  ;;  %v2234_v27 = vpop.f32.mrb[26].mxu1 }
 0x8a6   :  { %v2239_v34 = vrot.slane %v2192_v26, 4  ;;  %v2243_v35 = vrot.slane %v2234_v27, 4  ;;  %v2194_v36 = vpop.f32.mrb[27].mxu0  ;;  %v2680_v38 = vpop.f32.mrb[27].mxu1 }
 0x8a8   :  { %v2241_v40 = vsel %vm1943_vm3, %v2239_v34, %v2238_v28  ;;  %v2244_v41 = vsel %vm1943_vm3, %v2242_v30, %v2243_v35  ;;  %v2240_v42 = vsel %vm1943_vm3, %v2238_v28, %v2239_v34  ;;  %v2245_v43 = vsel %vm1943_vm3, %v2243_v35, %v2242_v30 }
 0x8a9   :  { %v2246_v45 = vsel %vm1674_vm4, %v2241_v40, 0.0  ;;  %v2247_v46 = vsel %vm1675_vm5, %v2240_v42, 0.0  ;;  %v2250_v50 = vsel %vm1676_vm6, %v2244_v41, 0.0  ;;  %v2251_v51 = vsel %vm1677_vm7, %v2245_v43, 0.0 }
 0x8aa   :  { %v2248_v0 = vadd.f32 %v2246_v45, %v2190_v24  ;;  %v2249_v47 = vadd.f32 %v2247_v46, %v2194_v36 }
 0x8ac   :  { %v2252_v53 = vadd.f32 %v2250_v50, %v2248_v0  ;;  %v2253_v54 = vadd.f32 %v2251_v51, %v2249_v47 }
 0x8ae   :  { %v2261_v56 = vadd.f32 %v2460_v52, %v2252_v53  ;;  %v2262_v13 = vadd.f32 %v2460_v52, %v2253_v54 }
 0x8b0   :  { %v2263_v14 = vadd.f32 %v2261_v56, %v1668_v29  ;;  %v2264_v57 = vadd.f32 %v2262_v13, %v1671_v55 }
 0x8b2   :  { %v2468_v58 = vpack.c.bf16 %v2264_v57, %v2263_v14 }
 0x8b4   :  { %2469 = vst [vmem:[#allocation29] sm:$0xff] %v2468_v58  }
 0x8b5   :  { %3317 = shalt.err (!%p3314_p0)
}
 0x8b6   :  { %s4016_s11 = sld [smem:[#allocation42_spill]] }
 0x8bc   :  { %s3318_s23 = scalar_lea.hbm %s4016_s11, 128 }
 0x8bd   :  { %p3319_p1 = scmp.ne.s32.totalorder %s4016_s11, %s3318_s23  ;;  %p3322_p2 = scmp.lt.u32.totalorder %s3318_s23, %s4016_s11 }
 0x8bf   :  { %p3324_p3 = pnand %p3322_p2, %p3319_p1 }
 0x8c1   :  { %3327 = shalt.err (!%p3324_p3)
}
 0x8c2   :  { %2286 = dma.vmem_to_hbm [thread:$0]  %s2281_s10, 128, %s4016_s11, [#allocation4], %s3358_s13, %s3358_s13, %s3359_s25  }
 0x8c3   :  { %3346 = dma.done.wait [#allocation4], 128  }
 0x8c4   :  { %3347 = vsyncadd [#allocation4], 4294967168 }
 0x8c5   :  { %2290 = vsyncpa [#allocation3], 1 }
 0x8c6   :  { %2291 = vsyncpa [#allocation6], 1 }
 0x8c7   :  { %2292 = vsyncpa [#allocation9], 1 }
 0x8c8   :  { %2293 = vsyncpa [#allocation12], 1 }
 0x8c9   :  { %2294 = vsyncpa [#allocation15], 1 }
 0x8ca   :  { %2295 = vsyncpa [#allocation18], 1 }
 0x8cb   :  { %2296 = vsyncpa [#allocation21], 1 }
 0x8cc   :  { %2297 = vsyncpa [#allocation24], 1 }
 0x8cd   :  { %2298 = vsyncpa [#allocation27], 1 }
 0x8ce   :  { %2299 = vsyncpa [#allocation4], 1 }

</bundles_post_ra>
